<compile_context>
chip_gen: v6e
topology: v6e:2x2x1
jax: 0.10.0
libtpu: 0.0.40
codegen_flags: <defaults>
</compile_context>

<pallas_src>
import functools

import jax
import jax.numpy as jnp
from jax import lax
from jax.experimental import pallas as pl
from jax.experimental.pallas import tpu as pltpu

_NEG_INF = -1e30
_LANE = 128


def _spec(shape):
    return pl.BlockSpec(shape, lambda i: (0,) * len(shape))


def _elu(x):
    # TODO(synk): expm1 avoided (exp is guaranteed to lower in Mosaic).
    return jnp.where(x > 0.0, x, jnp.exp(x) - 1.0)


def _sigmoid(x):
    return pl.reciprocal(1.0 + jnp.exp(-x), approx=True)


# ----------------------------- fused kernel body ----------------------------

def _gat_layer(x, w_aug, u_src_t, bias, adj_add, heads, f):
    """Dense multi-head GATConv (concat=True) + post-concat bias + F.elu."""
    hf = heads * f
    # One wide MXU matmul: per-head transform already in concat layout, plus
    # folded att_dst columns (a_dst[:, h] at column hf + h).
    xh_full = jnp.dot(x, w_aug, preferred_element_type=jnp.float32)    # [N, hf+H]
    xh = xh_full[:, :hf]                                               # [N, hf]
    # a_src directly in row layout [H, N]; depends only on x (parallel with
    # the main matmul), contraction on the last dim of both -> no transpose.
    a_src = lax.dot_general(u_src_t, x, (((1,), (1,)), ((), ())),
                            preferred_element_type=jnp.float32)        # [H, N]

    col = lax.broadcasted_iota(jnp.int32, (1, hf), 1)
    agg = None
    for h in range(heads):
        # e[i, j] = LeakyReLU(a_dst[i] + a_src[j], 0.2) + edge mask
        e = xh_full[:, hf + h:hf + h + 1] + a_src[h:h + 1, :]          # [N, N]
        e = jnp.where(e > 0.0, e, 0.2 * e)
        e = e + adj_add
        e = e - jnp.max(e, axis=-1, keepdims=True)
        p = jnp.exp(e)
        den = jnp.sum(p, axis=-1, keepdims=True)
        p = p * pl.reciprocal(jnp.maximum(den, 1e-30), approx=True)    # [N, N]
        # Aggregation stays in the concatenated [N, hf] lane layout: zero the
        # other heads' columns instead of slicing / concatenating lane blocks.
        mh = jnp.where((col >= h * f) & (col < (h + 1) * f),
                       jnp.float32(1.0), jnp.float32(0.0))
        term = jnp.dot(p, xh * mh, preferred_element_type=jnp.float32)
        agg = term if agg is None else agg + term
    return _elu(agg + bias)


def _branch(x, adj_add, layers, heads):
    """conv -> ELU -> (dropout no-op) -> residual-if-same-shape, per layer."""
    x_prev = x
    n_layers = len(layers)
    for i, (w_aug, u_src_t, bias, f) in enumerate(layers):
        x_new = _gat_layer(x, w_aug, u_src_t, bias, adj_add, heads, f)
        # TODO(synk): F.dropout after each conv is a no-op in inference mode.
        if i < n_layers - 1:
            if x_new.shape == x_prev.shape:       # static trace-time check
                x_new = x_new + x_prev
            x_prev = x_new
        x = x_new
    return x


def _channel_score(x, w1, b1, w2_row, b2):
    """sigmoid(Linear(ReLU(Linear(x)))) -> [N, 1], fully in-kernel."""
    h = jnp.dot(x, w1, preferred_element_type=jnp.float32) + b1
    h = jnp.maximum(h, 0.0)
    s = jnp.sum(h * w2_row, axis=-1, keepdims=True) + b2
    return _sigmoid(s)


def _dhgat_kernel(cx_ref, sx_ref, cadj_ref, sadj_ref, slab_ref, out_ref, *,
                  layout, heads, f_c0, f_c1, f_s0, f_s1, out_dim):
    def ld(name):
        off, rows, cols = layout[name]
        return slab_ref[pl.ds(off, rows), pl.ds(0, cols)]

    # ---- the two GAT branches ----
    c_x = _branch(cx_ref[...], cadj_ref[...],
                  [(ld("c0_w"), ld("c0_us"), ld("c0_b"), f_c0),
                   (ld("c1_w"), ld("c1_us"), ld("c1_b"), f_c1)], heads)
    s_x = _branch(sx_ref[...], sadj_ref[...],
                  [(ld("s0_w"), ld("s0_us"), ld("s0_b"), f_s0),
                   (ld("s1_w"), ld("s1_us"), ld("s1_b"), f_s1)], heads)

    # ---- BatchNorm1d (eval mode): y = x * scale + shift ----
    bn_c = ld("bn_c")
    bn_s = ld("bn_s")
    c_x = c_x * bn_c[0:1, :] + bn_c[1:2, :]
    s_x = s_x * bn_s[0:1, :] + bn_s[1:2, :]

    # ---- dual-channel attention (two tiny MLPs + pair softmax) ----
    c_aux = ld("ca_c_aux")
    s_aux = ld("ca_s_aux")
    sc = _channel_score(c_x, ld("ca_c_w1"),
                        c_aux[0:1, :], c_aux[1:2, :], c_aux[2:3, 0:1])
    ss = _channel_score(s_x, ld("ca_s_w1"),
                        s_aux[0:1, :], s_aux[1:2, :], s_aux[2:3, 0:1])
    m = jnp.maximum(sc, ss)
    ec = jnp.exp(sc - m)
    es = jnp.exp(ss - m)
    inv = pl.reciprocal(ec + es, approx=True)
    c_att = c_x * (ec * inv)
    s_att = s_x * (es * inv)

    # ---- classifier head (fc1 split host-side to avoid a lane concat) ----
    x1 = _elu(jnp.dot(c_att, ld("fc1_wa"), preferred_element_type=jnp.float32)
              + jnp.dot(s_att, ld("fc1_wb"), preferred_element_type=jnp.float32)
              + ld("fc1_b"))
    x2 = _elu(jnp.dot(x1, ld("fc2_w"), preferred_element_type=jnp.float32)
              + ld("fc2_b"))
    # TODO(synk): dropout after fc1/fc2 is a no-op in inference mode.
    if x2.shape == x1.shape:                      # static shape check (as in torch)
        x2 = x2 + x1
    logits = (jnp.dot(x2, ld("fc3_w"), preferred_element_type=jnp.float32)
              + ld("fc3_b"))                      # [N, 128] lane-dense

    # masked log_softmax over the logical classes (padded lanes excluded)
    col = lax.broadcasted_iota(jnp.int32, (1, logits.shape[-1]), 1)
    logits = jnp.where(col < out_dim, logits, jnp.float32(_NEG_INF))
    z = logits - jnp.max(logits, axis=-1, keepdims=True)
    out_ref[...] = z - jnp.log(jnp.sum(jnp.exp(z), axis=-1, keepdims=True))


# ------------------------------ host wrapper --------------------------------

def dhgat_forward(slab, content_x, social_x, content_adj_add, social_adj_add, *,
                  layout, heads, hidden_dim, output_dim, out_pad):
    n = content_x.shape[0]
    kernel = functools.partial(
        _dhgat_kernel, layout=layout, heads=heads,
        f_c0=hidden_dim * 2, f_c1=hidden_dim,
        f_s0=hidden_dim, f_s1=hidden_dim, out_dim=output_dim)
    args = (content_x, social_x, content_adj_add, social_adj_add, slab)
    out = pl.pallas_call(
        kernel,
        grid=(1,),
        in_specs=[_spec(a.shape) for a in args],
        out_specs=_spec((n, out_pad)),
        out_shape=jax.ShapeDtypeStruct((n, out_pad), jnp.float32),
        compiler_params=pltpu.CompilerParams(
            dimension_semantics=("arbitrary",)),
    )(*args)
    return out[:, :output_dim]


# ----------------------------- parameter packing ----------------------------

def _pack_slab(tensors):
    """Pack named 2-D f32 tensors (cols <= 128) into one [R,128] slab with
    8-row-aligned sub-blocks; returns (slab, {name: (row_off, rows, cols)})."""
    layout = {}
    blocks = []
    off = 0
    for name, arr in tensors.items():
        arr = jnp.asarray(arr, jnp.float32)
        r, c = arr.shape
        assert c <= _LANE, name
        layout[name] = (off, r, c)
        pad_r = -(-r // 8) * 8
        block = jnp.zeros((pad_r, _LANE), jnp.float32).at[:r, :c].set(arr)
        blocks.append(block)
        off += pad_r
    return jnp.concatenate(blocks, axis=0), layout


def init_params(key, content_dim, social_dim, hidden_dim, output_dim, heads):
    keys = iter(jax.random.split(key, 64))

    def nrm(shape, scale=0.1):
        return scale * jax.random.normal(next(keys), shape, jnp.float32)

    d = hidden_dim * heads
    tensors = {}

    def add_gat(prefix, in_dim, f):
        w = nrm((heads, in_dim, f))              # per-head lin weight [H, Din, F]
        att_src = nrm((heads, f))
        att_dst = nrm((heads, f))
        bias = nrm((1, heads * f))               # PyG single post-concat bias
        w_cat = jnp.transpose(w, (1, 0, 2)).reshape(in_dim, heads * f)
        u_dst = jnp.einsum("hif,hf->ih", w, att_dst)          # [Din, H]
        tensors[prefix + "_w"] = jnp.concatenate([w_cat, u_dst], axis=1)
        tensors[prefix + "_us"] = jnp.einsum("hif,hf->hi", w, att_src)  # [H, Din]
        tensors[prefix + "_b"] = bias

    # num_layers = 2 -> two convs per branch (PyTorch default)
    add_gat("c0", content_dim, hidden_dim * 2)
    add_gat("c1", hidden_dim * 2 * heads, hidden_dim)
    add_gat("s0", social_dim, hidden_dim)
    add_gat("s1", hidden_dim * heads, hidden_dim)

    # BatchNorm1d eval mode, PyTorch default running stats / affine params.
    # TODO(synk): fold real trained BN stats into these rows for a checkpoint.
    scale = jnp.full((1, d), 1.0 / jnp.sqrt(1.0 + 1e-5), jnp.float32)
    shift = jnp.zeros((1, d), jnp.float32)
    tensors["bn_c"] = jnp.concatenate([scale, shift], axis=0)
    tensors["bn_s"] = jnp.concatenate([scale, shift], axis=0)

    def add_ca(prefix):
        w1 = nrm((d, d // 2))
        b1 = nrm((1, d // 2))
        w2 = nrm((1, d // 2))                    # torch Linear(d//2, 1).weight layout
        b2 = nrm((1, 1))
        aux = jnp.zeros((3, d // 2), jnp.float32)
        aux = aux.at[0:1, :].set(b1).at[1:2, :].set(w2).at[2, 0].set(b2[0, 0])
        tensors[prefix + "_w1"] = w1
        tensors[prefix + "_aux"] = aux

    add_ca("ca_c")
    add_ca("ca_s")

    # classifier head; fc1 split into content/social halves, fc3 zero-padded
    # to a lane-dense 128-wide output.
    tensors["fc1_wa"] = nrm((d, hidden_dim * 2))
    tensors["fc1_wb"] = nrm((d, hidden_dim * 2))
    tensors["fc1_b"] = nrm((1, hidden_dim * 2))
    tensors["fc2_w"] = nrm((hidden_dim * 2, hidden_dim))
    tensors["fc2_b"] = nrm((1, hidden_dim))
    out_pad = -(-output_dim // _LANE) * _LANE
    tensors["fc3_w"] = jnp.zeros((hidden_dim, out_pad), jnp.float32).at[
        :, :output_dim].set(nrm((hidden_dim, output_dim)))
    tensors["fc3_b"] = jnp.zeros((1, out_pad), jnp.float32).at[
        :, :output_dim].set(nrm((1, output_dim)))

    slab, layout = _pack_slab(tensors)
    return slab, layout, out_pad


# --------------------------------- main --------------------------------------

if __name__ == "__main__":
    N = 16
    content_dim, social_dim, hidden_dim, output_dim, heads = 16, 12, 8, 4, 2

    key = jax.random.PRNGKey(0)
    k1, k2, k3 = jax.random.split(key, 3)
    content_x = jax.random.normal(k1, (N, content_dim), jnp.float32)
    social_x = jax.random.normal(k2, (N, social_dim), jnp.float32)
    slab, layout, out_pad = init_params(
        k3, content_dim, social_dim, hidden_dim, output_dim, heads)

    # deterministic edge lists (src -> dst), converted on the host to dense
    # additive masks (0 for edge / self-loop, -1e30 otherwise).
    src = jnp.array(list(range(N)) * 2, jnp.int32)
    dst_c = jnp.array([(i + 1) % N for i in range(N)]
                      + [(i + 3) % N for i in range(N)], jnp.int32)
    dst_s = jnp.array([(i + 2) % N for i in range(N)]
                      + [(i + 5) % N for i in range(N)], jnp.int32)

    def to_adj_add(s, d_):
        adj = jnp.zeros((N, N), jnp.float32).at[d_, s].set(1.0)
        adj = jnp.maximum(adj, jnp.eye(N, dtype=jnp.float32))   # add_self_loops
        return jnp.where(adj > 0, jnp.float32(0.0), jnp.float32(_NEG_INF))

    content_adj_add = to_adj_add(src, dst_c)
    social_adj_add = to_adj_add(src, dst_s)

    fwd = jax.jit(functools.partial(
        dhgat_forward, layout=layout, heads=heads, hidden_dim=hidden_dim,
        output_dim=output_dim, out_pad=out_pad))
    out = fwd(slab, content_x, social_x, content_adj_add, social_adj_add)
    out = jax.block_until_ready(out)
    assert out.shape == (N, output_dim)
    assert bool(jnp.all(jnp.isfinite(out)))
    print("KERNEL_OK")
</pallas_src>

<mosaic_0001>
module attributes {stable_mosaic.version = 11 : i64} {
  func.func @_dhgat_kernel(%arg0: i32, %arg1: memref<16x16xf32, #tpu.memory_space<vmem>>, %arg2: memref<16x12xf32, #tpu.memory_space<vmem>>, %arg3: memref<16x16xf32, #tpu.memory_space<vmem>>, %arg4: memref<16x16xf32, #tpu.memory_space<vmem>>, %arg5: memref<288x128xf32, #tpu.memory_space<vmem>>, %arg6: memref<16x128xf32, #tpu.memory_space<vmem>>) attributes {dimension_semantics = [#tpu.dimension_semantics<arbitrary>], iteration_bounds = array<i64: 1>, scalar_prefetch = 0 : i64, scratch_operands = 0 : i64, tpu.core_type = #tpu.core_type<tc>, window_params = [{pipeline_mode = #tpu.pipeline_mode<synchronous>, transform_indices = @transform_0, window_bounds = array<i64: 16, 16>}, {pipeline_mode = #tpu.pipeline_mode<synchronous>, transform_indices = @transform_1, window_bounds = array<i64: 16, 12>}, {pipeline_mode = #tpu.pipeline_mode<synchronous>, transform_indices = @transform_2, window_bounds = array<i64: 16, 16>}, {pipeline_mode = #tpu.pipeline_mode<synchronous>, transform_indices = @transform_3, window_bounds = array<i64: 16, 16>}, {pipeline_mode = #tpu.pipeline_mode<synchronous>, transform_indices = @transform_4, window_bounds = array<i64: 288, 128>}, {pipeline_mode = #tpu.pipeline_mode<synchronous>, transform_indices = @transform_5, window_bounds = array<i64: 16, 128>}]} {
    %c0 = arith.constant 0 : index
    %c0_0 = arith.constant 0 : index
    %0 = vector.load %arg1[%c0, %c0_0] : memref<16x16xf32, #tpu.memory_space<vmem>>, vector<16x16xf32>
    %c0_1 = arith.constant 0 : index
    %c0_2 = arith.constant 0 : index
    %1 = vector.load %arg3[%c0_1, %c0_2] : memref<16x16xf32, #tpu.memory_space<vmem>>, vector<16x16xf32>
    %c0_3 = arith.constant 0 : index
    %c0_4 = arith.constant 0 : index
    %2 = vector.load %arg5[%c0_3, %c0_4] : memref<288x128xf32, #tpu.memory_space<vmem>>, vector<16x34xf32>
    %c16 = arith.constant 16 : index
    %c0_5 = arith.constant 0 : index
    %3 = vector.load %arg5[%c16, %c0_5] : memref<288x128xf32, #tpu.memory_space<vmem>>, vector<2x16xf32>
    %c24 = arith.constant 24 : index
    %c0_6 = arith.constant 0 : index
    %4 = vector.load %arg5[%c24, %c0_6] : memref<288x128xf32, #tpu.memory_space<vmem>>, vector<1x32xf32>
    %c32 = arith.constant 32 : index
    %c0_7 = arith.constant 0 : index
    %5 = vector.load %arg5[%c32, %c0_7] : memref<288x128xf32, #tpu.memory_space<vmem>>, vector<32x18xf32>
    %c64 = arith.constant 64 : index
    %c0_8 = arith.constant 0 : index
    %6 = vector.load %arg5[%c64, %c0_8] : memref<288x128xf32, #tpu.memory_space<vmem>>, vector<2x32xf32>
    %c72 = arith.constant 72 : index
    %c0_9 = arith.constant 0 : index
    %7 = vector.load %arg5[%c72, %c0_9] : memref<288x128xf32, #tpu.memory_space<vmem>>, vector<1x16xf32>
    %cst = arith.constant dense<0.000000e+00> : vector<16x34xf32>
    %8 = tpu.matmul %0, %2, %cst {dimension_numbers = #tpu.dot_dimension_numbers<[1], [0], [0], [1], [0, 0, 1, 1], [], []>} : vector<16x16xf32>, vector<16x34xf32>, vector<16x34xf32> -> vector<16x34xf32>
    %9 = vector.extract_strided_slice %8 {offsets = [0, 0], sizes = [16, 32], strides = [1, 1]} : vector<16x34xf32> to vector<16x32xf32>
    %cst_10 = arith.constant dense<0.000000e+00> : vector<2x16xf32>
    %10 = tpu.matmul %3, %0, %cst_10 {dimension_numbers = #tpu.dot_dimension_numbers<[1], [1], [0], [0], [0, 0, 1, 0], [], []>} : vector<2x16xf32>, vector<16x16xf32>, vector<2x16xf32> -> vector<2x16xf32>
    %11 = tpu.iota {dimensions = array<i32: 1>} : vector<1x32xi32>
    %12 = vector.extract_strided_slice %8 {offsets = [0, 32], sizes = [16, 1], strides = [1, 1]} : vector<16x34xf32> to vector<16x1xf32>
    %13 = vector.extract_strided_slice %10 {offsets = [0, 0], sizes = [1, 16], strides = [1, 1]} : vector<2x16xf32> to vector<1x16xf32>
    %14 = vector.broadcast %12 : vector<16x1xf32> to vector<16x16xf32>
    %15 = vector.broadcast %13 : vector<1x16xf32> to vector<16x16xf32>
    %16 = arith.addf %14, %15 : vector<16x16xf32>
    %cst_11 = arith.constant 0.000000e+00 : f32
    %17 = vector.broadcast %cst_11 : f32 to vector<16x16xf32>
    %18 = arith.cmpf ogt, %16, %17 : vector<16x16xf32>
    %cst_12 = arith.constant 2.000000e-01 : f32
    %19 = vector.broadcast %cst_12 : f32 to vector<16x16xf32>
    %20 = arith.mulf %19, %16 : vector<16x16xf32>
    %21 = arith.select %18, %16, %20 : vector<16x16xi1>, vector<16x16xf32>
    %22 = arith.addf %21, %1 : vector<16x16xf32>
    %cst_13 = arith.constant dense<0xFF800000> : vector<16xf32>
    %23 = vector.multi_reduction <maximumf>, %22, %cst_13 [1] : vector<16x16xf32> to vector<16xf32>
    %24 = vector.shape_cast %23 : vector<16xf32> to vector<16x1xf32>
    %25 = vector.broadcast %24 : vector<16x1xf32> to vector<16x16xf32>
    %26 = arith.subf %22, %25 : vector<16x16xf32>
    %27 = math.exp %26 : vector<16x16xf32>
    %cst_14 = arith.constant dense<0.000000e+00> : vector<16xf32>
    %28 = vector.multi_reduction <add>, %27, %cst_14 [1] : vector<16x16xf32> to vector<16xf32>
    %29 = vector.shape_cast %28 : vector<16xf32> to vector<16x1xf32>
    %cst_15 = arith.constant 1.000000e-30 : f32
    %30 = vector.broadcast %cst_15 : f32 to vector<16x1xf32>
    %31 = arith.maximumf %29, %30 : vector<16x1xf32>
    %32 = tpu.reciprocal %31 {approx = true} : vector<16x1xf32> -> vector<16x1xf32>
    %33 = vector.broadcast %32 : vector<16x1xf32> to vector<16x16xf32>
    %34 = arith.mulf %27, %33 : vector<16x16xf32>
    %c0_i32 = arith.constant 0 : i32
    %35 = vector.broadcast %c0_i32 : i32 to vector<1x32xi32>
    %36 = arith.cmpi sge, %11, %35 : vector<1x32xi32>
    %c16_i32 = arith.constant 16 : i32
    %37 = vector.broadcast %c16_i32 : i32 to vector<1x32xi32>
    %38 = arith.cmpi slt, %11, %37 : vector<1x32xi32>
    %39 = arith.andi %36, %38 : vector<1x32xi1>
    %cst_16 = arith.constant 1.000000e+00 : f32
    %cst_17 = arith.constant 0.000000e+00 : f32
    %40 = vector.broadcast %cst_16 : f32 to vector<1x32xf32>
    %41 = vector.broadcast %cst_17 : f32 to vector<1x32xf32>
    %42 = arith.select %39, %40, %41 : vector<1x32xi1>, vector<1x32xf32>
    %43 = vector.broadcast %42 : vector<1x32xf32> to vector<16x32xf32>
    %44 = arith.mulf %9, %43 : vector<16x32xf32>
    %cst_18 = arith.constant dense<0.000000e+00> : vector<16x32xf32>
    %45 = tpu.matmul %34, %44, %cst_18 {dimension_numbers = #tpu.dot_dimension_numbers<[1], [0], [0], [1], [0, 0, 1, 1], [], []>} : vector<16x16xf32>, vector<16x32xf32>, vector<16x32xf32> -> vector<16x32xf32>
    %46 = vector.extract_strided_slice %8 {offsets = [0, 33], sizes = [16, 1], strides = [1, 1]} : vector<16x34xf32> to vector<16x1xf32>
    %47 = vector.extract_strided_slice %10 {offsets = [1, 0], sizes = [1, 16], strides = [1, 1]} : vector<2x16xf32> to vector<1x16xf32>
    %48 = vector.broadcast %46 : vector<16x1xf32> to vector<16x16xf32>
    %49 = vector.broadcast %47 : vector<1x16xf32> to vector<16x16xf32>
    %50 = arith.addf %48, %49 : vector<16x16xf32>
    %cst_19 = arith.constant 0.000000e+00 : f32
    %51 = vector.broadcast %cst_19 : f32 to vector<16x16xf32>
    %52 = arith.cmpf ogt, %50, %51 : vector<16x16xf32>
    %cst_20 = arith.constant 2.000000e-01 : f32
    %53 = vector.broadcast %cst_20 : f32 to vector<16x16xf32>
    %54 = arith.mulf %53, %50 : vector<16x16xf32>
    %55 = arith.select %52, %50, %54 : vector<16x16xi1>, vector<16x16xf32>
    %56 = arith.addf %55, %1 : vector<16x16xf32>
    %cst_21 = arith.constant dense<0xFF800000> : vector<16xf32>
    %57 = vector.multi_reduction <maximumf>, %56, %cst_21 [1] : vector<16x16xf32> to vector<16xf32>
    %58 = vector.shape_cast %57 : vector<16xf32> to vector<16x1xf32>
    %59 = vector.broadcast %58 : vector<16x1xf32> to vector<16x16xf32>
    %60 = arith.subf %56, %59 : vector<16x16xf32>
    %61 = math.exp %60 : vector<16x16xf32>
    %cst_22 = arith.constant dense<0.000000e+00> : vector<16xf32>
    %62 = vector.multi_reduction <add>, %61, %cst_22 [1] : vector<16x16xf32> to vector<16xf32>
    %63 = vector.shape_cast %62 : vector<16xf32> to vector<16x1xf32>
    %cst_23 = arith.constant 1.000000e-30 : f32
    %64 = vector.broadcast %cst_23 : f32 to vector<16x1xf32>
    %65 = arith.maximumf %63, %64 : vector<16x1xf32>
    %66 = tpu.reciprocal %65 {approx = true} : vector<16x1xf32> -> vector<16x1xf32>
    %67 = vector.broadcast %66 : vector<16x1xf32> to vector<16x16xf32>
    %68 = arith.mulf %61, %67 : vector<16x16xf32>
    %c16_i32_24 = arith.constant 16 : i32
    %69 = vector.broadcast %c16_i32_24 : i32 to vector<1x32xi32>
    %70 = arith.cmpi sge, %11, %69 : vector<1x32xi32>
    %c32_i32 = arith.constant 32 : i32
    %71 = vector.broadcast %c32_i32 : i32 to vector<1x32xi32>
    %72 = arith.cmpi slt, %11, %71 : vector<1x32xi32>
    %73 = arith.andi %70, %72 : vector<1x32xi1>
    %cst_25 = arith.constant 1.000000e+00 : f32
    %cst_26 = arith.constant 0.000000e+00 : f32
    %74 = vector.broadcast %cst_25 : f32 to vector<1x32xf32>
    %75 = vector.broadcast %cst_26 : f32 to vector<1x32xf32>
    %76 = arith.select %73, %74, %75 : vector<1x32xi1>, vector<1x32xf32>
    %77 = vector.broadcast %76 : vector<1x32xf32> to vector<16x32xf32>
    %78 = arith.mulf %9, %77 : vector<16x32xf32>
    %cst_27 = arith.constant dense<0.000000e+00> : vector<16x32xf32>
    %79 = tpu.matmul %68, %78, %cst_27 {dimension_numbers = #tpu.dot_dimension_numbers<[1], [0], [0], [1], [0, 0, 1, 1], [], []>} : vector<16x16xf32>, vector<16x32xf32>, vector<16x32xf32> -> vector<16x32xf32>
    %80 = arith.addf %45, %79 : vector<16x32xf32>
    %81 = vector.broadcast %4 : vector<1x32xf32> to vector<16x32xf32>
    %82 = arith.addf %80, %81 : vector<16x32xf32>
    %cst_28 = arith.constant 0.000000e+00 : f32
    %83 = vector.broadcast %cst_28 : f32 to vector<16x32xf32>
    %84 = arith.cmpf ogt, %82, %83 : vector<16x32xf32>
    %85 = math.exp %82 : vector<16x32xf32>
    %cst_29 = arith.constant 1.000000e+00 : f32
    %86 = vector.broadcast %cst_29 : f32 to vector<16x32xf32>
    %87 = arith.subf %85, %86 : vector<16x32xf32>
    %88 = arith.select %84, %82, %87 : vector<16x32xi1>, vector<16x32xf32>
    %cst_30 = arith.constant dense<0.000000e+00> : vector<16x18xf32>
    %89 = tpu.matmul %88, %5, %cst_30 {dimension_numbers = #tpu.dot_dimension_numbers<[1], [0], [0], [1], [0, 0, 1, 1], [], []>} : vector<16x32xf32>, vector<32x18xf32>, vector<16x18xf32> -> vector<16x18xf32>
    %90 = vector.extract_strided_slice %89 {offsets = [0, 0], sizes = [16, 16], strides = [1, 1]} : vector<16x18xf32> to vector<16x16xf32>
    %cst_31 = arith.constant dense<0.000000e+00> : vector<2x16xf32>
    %91 = tpu.matmul %6, %88, %cst_31 {dimension_numbers = #tpu.dot_dimension_numbers<[1], [1], [0], [0], [0, 0, 1, 0], [], []>} : vector<2x32xf32>, vector<16x32xf32>, vector<2x16xf32> -> vector<2x16xf32>
    %92 = tpu.iota {dimensions = array<i32: 1>} : vector<1x16xi32>
    %93 = vector.extract_strided_slice %89 {offsets = [0, 16], sizes = [16, 1], strides = [1, 1]} : vector<16x18xf32> to vector<16x1xf32>
    %94 = vector.extract_strided_slice %91 {offsets = [0, 0], sizes = [1, 16], strides = [1, 1]} : vector<2x16xf32> to vector<1x16xf32>
    %95 = vector.broadcast %93 : vector<16x1xf32> to vector<16x16xf32>
    %96 = vector.broadcast %94 : vector<1x16xf32> to vector<16x16xf32>
    %97 = arith.addf %95, %96 : vector<16x16xf32>
    %cst_32 = arith.constant 0.000000e+00 : f32
    %98 = vector.broadcast %cst_32 : f32 to vector<16x16xf32>
    %99 = arith.cmpf ogt, %97, %98 : vector<16x16xf32>
    %cst_33 = arith.constant 2.000000e-01 : f32
    %100 = vector.broadcast %cst_33 : f32 to vector<16x16xf32>
    %101 = arith.mulf %100, %97 : vector<16x16xf32>
    %102 = arith.select %99, %97, %101 : vector<16x16xi1>, vector<16x16xf32>
    %103 = arith.addf %102, %1 : vector<16x16xf32>
    %cst_34 = arith.constant dense<0xFF800000> : vector<16xf32>
    %104 = vector.multi_reduction <maximumf>, %103, %cst_34 [1] : vector<16x16xf32> to vector<16xf32>
    %105 = vector.shape_cast %104 : vector<16xf32> to vector<16x1xf32>
    %106 = vector.broadcast %105 : vector<16x1xf32> to vector<16x16xf32>
    %107 = arith.subf %103, %106 : vector<16x16xf32>
    %108 = math.exp %107 : vector<16x16xf32>
    %cst_35 = arith.constant dense<0.000000e+00> : vector<16xf32>
    %109 = vector.multi_reduction <add>, %108, %cst_35 [1] : vector<16x16xf32> to vector<16xf32>
    %110 = vector.shape_cast %109 : vector<16xf32> to vector<16x1xf32>
    %cst_36 = arith.constant 1.000000e-30 : f32
    %111 = vector.broadcast %cst_36 : f32 to vector<16x1xf32>
    %112 = arith.maximumf %110, %111 : vector<16x1xf32>
    %113 = tpu.reciprocal %112 {approx = true} : vector<16x1xf32> -> vector<16x1xf32>
    %114 = vector.broadcast %113 : vector<16x1xf32> to vector<16x16xf32>
    %115 = arith.mulf %108, %114 : vector<16x16xf32>
    %c0_i32_37 = arith.constant 0 : i32
    %116 = vector.broadcast %c0_i32_37 : i32 to vector<1x16xi32>
    %117 = arith.cmpi sge, %92, %116 : vector<1x16xi32>
    %c8_i32 = arith.constant 8 : i32
    %118 = vector.broadcast %c8_i32 : i32 to vector<1x16xi32>
    %119 = arith.cmpi slt, %92, %118 : vector<1x16xi32>
    %120 = arith.andi %117, %119 : vector<1x16xi1>
    %cst_38 = arith.constant 1.000000e+00 : f32
    %cst_39 = arith.constant 0.000000e+00 : f32
    %121 = vector.broadcast %cst_38 : f32 to vector<1x16xf32>
    %122 = vector.broadcast %cst_39 : f32 to vector<1x16xf32>
    %123 = arith.select %120, %121, %122 : vector<1x16xi1>, vector<1x16xf32>
    %124 = vector.broadcast %123 : vector<1x16xf32> to vector<16x16xf32>
    %125 = arith.mulf %90, %124 : vector<16x16xf32>
    %cst_40 = arith.constant dense<0.000000e+00> : vector<16x16xf32>
    %126 = tpu.matmul %115, %125, %cst_40 {dimension_numbers = #tpu.dot_dimension_numbers<[1], [0], [0], [1], [0, 0, 1, 1], [], []>} : vector<16x16xf32>, vector<16x16xf32>, vector<16x16xf32> -> vector<16x16xf32>
    %127 = vector.extract_strided_slice %89 {offsets = [0, 17], sizes = [16, 1], strides = [1, 1]} : vector<16x18xf32> to vector<16x1xf32>
    %128 = vector.extract_strided_slice %91 {offsets = [1, 0], sizes = [1, 16], strides = [1, 1]} : vector<2x16xf32> to vector<1x16xf32>
    %129 = vector.broadcast %127 : vector<16x1xf32> to vector<16x16xf32>
    %130 = vector.broadcast %128 : vector<1x16xf32> to vector<16x16xf32>
    %131 = arith.addf %129, %130 : vector<16x16xf32>
    %cst_41 = arith.constant 0.000000e+00 : f32
    %132 = vector.broadcast %cst_41 : f32 to vector<16x16xf32>
    %133 = arith.cmpf ogt, %131, %132 : vector<16x16xf32>
    %cst_42 = arith.constant 2.000000e-01 : f32
    %134 = vector.broadcast %cst_42 : f32 to vector<16x16xf32>
    %135 = arith.mulf %134, %131 : vector<16x16xf32>
    %136 = arith.select %133, %131, %135 : vector<16x16xi1>, vector<16x16xf32>
    %137 = arith.addf %136, %1 : vector<16x16xf32>
    %cst_43 = arith.constant dense<0xFF800000> : vector<16xf32>
    %138 = vector.multi_reduction <maximumf>, %137, %cst_43 [1] : vector<16x16xf32> to vector<16xf32>
    %139 = vector.shape_cast %138 : vector<16xf32> to vector<16x1xf32>
    %140 = vector.broadcast %139 : vector<16x1xf32> to vector<16x16xf32>
    %141 = arith.subf %137, %140 : vector<16x16xf32>
    %142 = math.exp %141 : vector<16x16xf32>
    %cst_44 = arith.constant dense<0.000000e+00> : vector<16xf32>
    %143 = vector.multi_reduction <add>, %142, %cst_44 [1] : vector<16x16xf32> to vector<16xf32>
    %144 = vector.shape_cast %143 : vector<16xf32> to vector<16x1xf32>
    %cst_45 = arith.constant 1.000000e-30 : f32
    %145 = vector.broadcast %cst_45 : f32 to vector<16x1xf32>
    %146 = arith.maximumf %144, %145 : vector<16x1xf32>
    %147 = tpu.reciprocal %146 {approx = true} : vector<16x1xf32> -> vector<16x1xf32>
    %148 = vector.broadcast %147 : vector<16x1xf32> to vector<16x16xf32>
    %149 = arith.mulf %142, %148 : vector<16x16xf32>
    %c8_i32_46 = arith.constant 8 : i32
    %150 = vector.broadcast %c8_i32_46 : i32 to vector<1x16xi32>
    %151 = arith.cmpi sge, %92, %150 : vector<1x16xi32>
    %c16_i32_47 = arith.constant 16 : i32
    %152 = vector.broadcast %c16_i32_47 : i32 to vector<1x16xi32>
    %153 = arith.cmpi slt, %92, %152 : vector<1x16xi32>
    %154 = arith.andi %151, %153 : vector<1x16xi1>
    %cst_48 = arith.constant 1.000000e+00 : f32
    %cst_49 = arith.constant 0.000000e+00 : f32
    %155 = vector.broadcast %cst_48 : f32 to vector<1x16xf32>
    %156 = vector.broadcast %cst_49 : f32 to vector<1x16xf32>
    %157 = arith.select %154, %155, %156 : vector<1x16xi1>, vector<1x16xf32>
    %158 = vector.broadcast %157 : vector<1x16xf32> to vector<16x16xf32>
    %159 = arith.mulf %90, %158 : vector<16x16xf32>
    %cst_50 = arith.constant dense<0.000000e+00> : vector<16x16xf32>
    %160 = tpu.matmul %149, %159, %cst_50 {dimension_numbers = #tpu.dot_dimension_numbers<[1], [0], [0], [1], [0, 0, 1, 1], [], []>} : vector<16x16xf32>, vector<16x16xf32>, vector<16x16xf32> -> vector<16x16xf32>
    %161 = arith.addf %126, %160 : vector<16x16xf32>
    %162 = vector.broadcast %7 : vector<1x16xf32> to vector<16x16xf32>
    %163 = arith.addf %161, %162 : vector<16x16xf32>
    %cst_51 = arith.constant 0.000000e+00 : f32
    %164 = vector.broadcast %cst_51 : f32 to vector<16x16xf32>
    %165 = arith.cmpf ogt, %163, %164 : vector<16x16xf32>
    %166 = math.exp %163 : vector<16x16xf32>
    %cst_52 = arith.constant 1.000000e+00 : f32
    %167 = vector.broadcast %cst_52 : f32 to vector<16x16xf32>
    %168 = arith.subf %166, %167 : vector<16x16xf32>
    %169 = arith.select %165, %163, %168 : vector<16x16xi1>, vector<16x16xf32>
    %c0_53 = arith.constant 0 : index
    %c0_54 = arith.constant 0 : index
    %170 = vector.load %arg2[%c0_53, %c0_54] : memref<16x12xf32, #tpu.memory_space<vmem>>, vector<16x12xf32>
    %c0_55 = arith.constant 0 : index
    %c0_56 = arith.constant 0 : index
    %171 = vector.load %arg4[%c0_55, %c0_56] : memref<16x16xf32, #tpu.memory_space<vmem>>, vector<16x16xf32>
    %c80 = arith.constant 80 : index
    %c0_57 = arith.constant 0 : index
    %172 = vector.load %arg5[%c80, %c0_57] : memref<288x128xf32, #tpu.memory_space<vmem>>, vector<12x18xf32>
    %c96 = arith.constant 96 : index
    %c0_58 = arith.constant 0 : index
    %173 = vector.load %arg5[%c96, %c0_58] : memref<288x128xf32, #tpu.memory_space<vmem>>, vector<2x12xf32>
    %c104 = arith.constant 104 : index
    %c0_59 = arith.constant 0 : index
    %174 = vector.load %arg5[%c104, %c0_59] : memref<288x128xf32, #tpu.memory_space<vmem>>, vector<1x16xf32>
    %c112 = arith.constant 112 : index
    %c0_60 = arith.constant 0 : index
    %175 = vector.load %arg5[%c112, %c0_60] : memref<288x128xf32, #tpu.memory_space<vmem>>, vector<16x18xf32>
    %c128 = arith.constant 128 : index
    %c0_61 = arith.constant 0 : index
    %176 = vector.load %arg5[%c128, %c0_61] : memref<288x128xf32, #tpu.memory_space<vmem>>, vector<2x16xf32>
    %c136 = arith.constant 136 : index
    %c0_62 = arith.constant 0 : index
    %177 = vector.load %arg5[%c136, %c0_62] : memref<288x128xf32, #tpu.memory_space<vmem>>, vector<1x16xf32>
    %cst_63 = arith.constant dense<0.000000e+00> : vector<16x18xf32>
    %178 = tpu.matmul %170, %172, %cst_63 {dimension_numbers = #tpu.dot_dimension_numbers<[1], [0], [0], [1], [0, 0, 1, 1], [], []>} : vector<16x12xf32>, vector<12x18xf32>, vector<16x18xf32> -> vector<16x18xf32>
    %179 = vector.extract_strided_slice %178 {offsets = [0, 0], sizes = [16, 16], strides = [1, 1]} : vector<16x18xf32> to vector<16x16xf32>
    %cst_64 = arith.constant dense<0.000000e+00> : vector<2x16xf32>
    %180 = tpu.matmul %173, %170, %cst_64 {dimension_numbers = #tpu.dot_dimension_numbers<[1], [1], [0], [0], [0, 0, 1, 0], [], []>} : vector<2x12xf32>, vector<16x12xf32>, vector<2x16xf32> -> vector<2x16xf32>
    %181 = tpu.iota {dimensions = array<i32: 1>} : vector<1x16xi32>
    %182 = vector.extract_strided_slice %178 {offsets = [0, 16], sizes = [16, 1], strides = [1, 1]} : vector<16x18xf32> to vector<16x1xf32>
    %183 = vector.extract_strided_slice %180 {offsets = [0, 0], sizes = [1, 16], strides = [1, 1]} : vector<2x16xf32> to vector<1x16xf32>
    %184 = vector.broadcast %182 : vector<16x1xf32> to vector<16x16xf32>
    %185 = vector.broadcast %183 : vector<1x16xf32> to vector<16x16xf32>
    %186 = arith.addf %184, %185 : vector<16x16xf32>
    %cst_65 = arith.constant 0.000000e+00 : f32
    %187 = vector.broadcast %cst_65 : f32 to vector<16x16xf32>
    %188 = arith.cmpf ogt, %186, %187 : vector<16x16xf32>
    %cst_66 = arith.constant 2.000000e-01 : f32
    %189 = vector.broadcast %cst_66 : f32 to vector<16x16xf32>
    %190 = arith.mulf %189, %186 : vector<16x16xf32>
    %191 = arith.select %188, %186, %190 : vector<16x16xi1>, vector<16x16xf32>
    %192 = arith.addf %191, %171 : vector<16x16xf32>
    %cst_67 = arith.constant dense<0xFF800000> : vector<16xf32>
    %193 = vector.multi_reduction <maximumf>, %192, %cst_67 [1] : vector<16x16xf32> to vector<16xf32>
    %194 = vector.shape_cast %193 : vector<16xf32> to vector<16x1xf32>
    %195 = vector.broadcast %194 : vector<16x1xf32> to vector<16x16xf32>
    %196 = arith.subf %192, %195 : vector<16x16xf32>
    %197 = math.exp %196 : vector<16x16xf32>
    %cst_68 = arith.constant dense<0.000000e+00> : vector<16xf32>
    %198 = vector.multi_reduction <add>, %197, %cst_68 [1] : vector<16x16xf32> to vector<16xf32>
    %199 = vector.shape_cast %198 : vector<16xf32> to vector<16x1xf32>
    %cst_69 = arith.constant 1.000000e-30 : f32
    %200 = vector.broadcast %cst_69 : f32 to vector<16x1xf32>
    %201 = arith.maximumf %199, %200 : vector<16x1xf32>
    %202 = tpu.reciprocal %201 {approx = true} : vector<16x1xf32> -> vector<16x1xf32>
    %203 = vector.broadcast %202 : vector<16x1xf32> to vector<16x16xf32>
    %204 = arith.mulf %197, %203 : vector<16x16xf32>
    %c0_i32_70 = arith.constant 0 : i32
    %205 = vector.broadcast %c0_i32_70 : i32 to vector<1x16xi32>
    %206 = arith.cmpi sge, %181, %205 : vector<1x16xi32>
    %c8_i32_71 = arith.constant 8 : i32
    %207 = vector.broadcast %c8_i32_71 : i32 to vector<1x16xi32>
    %208 = arith.cmpi slt, %181, %207 : vector<1x16xi32>
    %209 = arith.andi %206, %208 : vector<1x16xi1>
    %cst_72 = arith.constant 1.000000e+00 : f32
    %cst_73 = arith.constant 0.000000e+00 : f32
    %210 = vector.broadcast %cst_72 : f32 to vector<1x16xf32>
    %211 = vector.broadcast %cst_73 : f32 to vector<1x16xf32>
    %212 = arith.select %209, %210, %211 : vector<1x16xi1>, vector<1x16xf32>
    %213 = vector.broadcast %212 : vector<1x16xf32> to vector<16x16xf32>
    %214 = arith.mulf %179, %213 : vector<16x16xf32>
    %cst_74 = arith.constant dense<0.000000e+00> : vector<16x16xf32>
    %215 = tpu.matmul %204, %214, %cst_74 {dimension_numbers = #tpu.dot_dimension_numbers<[1], [0], [0], [1], [0, 0, 1, 1], [], []>} : vector<16x16xf32>, vector<16x16xf32>, vector<16x16xf32> -> vector<16x16xf32>
    %216 = vector.extract_strided_slice %178 {offsets = [0, 17], sizes = [16, 1], strides = [1, 1]} : vector<16x18xf32> to vector<16x1xf32>
    %217 = vector.extract_strided_slice %180 {offsets = [1, 0], sizes = [1, 16], strides = [1, 1]} : vector<2x16xf32> to vector<1x16xf32>
    %218 = vector.broadcast %216 : vector<16x1xf32> to vector<16x16xf32>
    %219 = vector.broadcast %217 : vector<1x16xf32> to vector<16x16xf32>
    %220 = arith.addf %218, %219 : vector<16x16xf32>
    %cst_75 = arith.constant 0.000000e+00 : f32
    %221 = vector.broadcast %cst_75 : f32 to vector<16x16xf32>
    %222 = arith.cmpf ogt, %220, %221 : vector<16x16xf32>
    %cst_76 = arith.constant 2.000000e-01 : f32
    %223 = vector.broadcast %cst_76 : f32 to vector<16x16xf32>
    %224 = arith.mulf %223, %220 : vector<16x16xf32>
    %225 = arith.select %222, %220, %224 : vector<16x16xi1>, vector<16x16xf32>
    %226 = arith.addf %225, %171 : vector<16x16xf32>
    %cst_77 = arith.constant dense<0xFF800000> : vector<16xf32>
    %227 = vector.multi_reduction <maximumf>, %226, %cst_77 [1] : vector<16x16xf32> to vector<16xf32>
    %228 = vector.shape_cast %227 : vector<16xf32> to vector<16x1xf32>
    %229 = vector.broadcast %228 : vector<16x1xf32> to vector<16x16xf32>
    %230 = arith.subf %226, %229 : vector<16x16xf32>
    %231 = math.exp %230 : vector<16x16xf32>
    %cst_78 = arith.constant dense<0.000000e+00> : vector<16xf32>
    %232 = vector.multi_reduction <add>, %231, %cst_78 [1] : vector<16x16xf32> to vector<16xf32>
    %233 = vector.shape_cast %232 : vector<16xf32> to vector<16x1xf32>
    %cst_79 = arith.constant 1.000000e-30 : f32
    %234 = vector.broadcast %cst_79 : f32 to vector<16x1xf32>
    %235 = arith.maximumf %233, %234 : vector<16x1xf32>
    %236 = tpu.reciprocal %235 {approx = true} : vector<16x1xf32> -> vector<16x1xf32>
    %237 = vector.broadcast %236 : vector<16x1xf32> to vector<16x16xf32>
    %238 = arith.mulf %231, %237 : vector<16x16xf32>
    %c8_i32_80 = arith.constant 8 : i32
    %239 = vector.broadcast %c8_i32_80 : i32 to vector<1x16xi32>
    %240 = arith.cmpi sge, %181, %239 : vector<1x16xi32>
    %c16_i32_81 = arith.constant 16 : i32
    %241 = vector.broadcast %c16_i32_81 : i32 to vector<1x16xi32>
    %242 = arith.cmpi slt, %181, %241 : vector<1x16xi32>
    %243 = arith.andi %240, %242 : vector<1x16xi1>
    %cst_82 = arith.constant 1.000000e+00 : f32
    %cst_83 = arith.constant 0.000000e+00 : f32
    %244 = vector.broadcast %cst_82 : f32 to vector<1x16xf32>
    %245 = vector.broadcast %cst_83 : f32 to vector<1x16xf32>
    %246 = arith.select %243, %244, %245 : vector<1x16xi1>, vector<1x16xf32>
    %247 = vector.broadcast %246 : vector<1x16xf32> to vector<16x16xf32>
    %248 = arith.mulf %179, %247 : vector<16x16xf32>
    %cst_84 = arith.constant dense<0.000000e+00> : vector<16x16xf32>
    %249 = tpu.matmul %238, %248, %cst_84 {dimension_numbers = #tpu.dot_dimension_numbers<[1], [0], [0], [1], [0, 0, 1, 1], [], []>} : vector<16x16xf32>, vector<16x16xf32>, vector<16x16xf32> -> vector<16x16xf32>
    %250 = arith.addf %215, %249 : vector<16x16xf32>
    %251 = vector.broadcast %174 : vector<1x16xf32> to vector<16x16xf32>
    %252 = arith.addf %250, %251 : vector<16x16xf32>
    %cst_85 = arith.constant 0.000000e+00 : f32
    %253 = vector.broadcast %cst_85 : f32 to vector<16x16xf32>
    %254 = arith.cmpf ogt, %252, %253 : vector<16x16xf32>
    %255 = math.exp %252 : vector<16x16xf32>
    %cst_86 = arith.constant 1.000000e+00 : f32
    %256 = vector.broadcast %cst_86 : f32 to vector<16x16xf32>
    %257 = arith.subf %255, %256 : vector<16x16xf32>
    %258 = arith.select %254, %252, %257 : vector<16x16xi1>, vector<16x16xf32>
    %cst_87 = arith.constant dense<0.000000e+00> : vector<16x18xf32>
    %259 = tpu.matmul %258, %175, %cst_87 {dimension_numbers = #tpu.dot_dimension_numbers<[1], [0], [0], [1], [0, 0, 1, 1], [], []>} : vector<16x16xf32>, vector<16x18xf32>, vector<16x18xf32> -> vector<16x18xf32>
    %260 = vector.extract_strided_slice %259 {offsets = [0, 0], sizes = [16, 16], strides = [1, 1]} : vector<16x18xf32> to vector<16x16xf32>
    %cst_88 = arith.constant dense<0.000000e+00> : vector<2x16xf32>
    %261 = tpu.matmul %176, %258, %cst_88 {dimension_numbers = #tpu.dot_dimension_numbers<[1], [1], [0], [0], [0, 0, 1, 0], [], []>} : vector<2x16xf32>, vector<16x16xf32>, vector<2x16xf32> -> vector<2x16xf32>
    %262 = tpu.iota {dimensions = array<i32: 1>} : vector<1x16xi32>
    %263 = vector.extract_strided_slice %259 {offsets = [0, 16], sizes = [16, 1], strides = [1, 1]} : vector<16x18xf32> to vector<16x1xf32>
    %264 = vector.extract_strided_slice %261 {offsets = [0, 0], sizes = [1, 16], strides = [1, 1]} : vector<2x16xf32> to vector<1x16xf32>
    %265 = vector.broadcast %263 : vector<16x1xf32> to vector<16x16xf32>
    %266 = vector.broadcast %264 : vector<1x16xf32> to vector<16x16xf32>
    %267 = arith.addf %265, %266 : vector<16x16xf32>
    %cst_89 = arith.constant 0.000000e+00 : f32
    %268 = vector.broadcast %cst_89 : f32 to vector<16x16xf32>
    %269 = arith.cmpf ogt, %267, %268 : vector<16x16xf32>
    %cst_90 = arith.constant 2.000000e-01 : f32
    %270 = vector.broadcast %cst_90 : f32 to vector<16x16xf32>
    %271 = arith.mulf %270, %267 : vector<16x16xf32>
    %272 = arith.select %269, %267, %271 : vector<16x16xi1>, vector<16x16xf32>
    %273 = arith.addf %272, %171 : vector<16x16xf32>
    %cst_91 = arith.constant dense<0xFF800000> : vector<16xf32>
    %274 = vector.multi_reduction <maximumf>, %273, %cst_91 [1] : vector<16x16xf32> to vector<16xf32>
    %275 = vector.shape_cast %274 : vector<16xf32> to vector<16x1xf32>
    %276 = vector.broadcast %275 : vector<16x1xf32> to vector<16x16xf32>
    %277 = arith.subf %273, %276 : vector<16x16xf32>
    %278 = math.exp %277 : vector<16x16xf32>
    %cst_92 = arith.constant dense<0.000000e+00> : vector<16xf32>
    %279 = vector.multi_reduction <add>, %278, %cst_92 [1] : vector<16x16xf32> to vector<16xf32>
    %280 = vector.shape_cast %279 : vector<16xf32> to vector<16x1xf32>
    %cst_93 = arith.constant 1.000000e-30 : f32
    %281 = vector.broadcast %cst_93 : f32 to vector<16x1xf32>
    %282 = arith.maximumf %280, %281 : vector<16x1xf32>
    %283 = tpu.reciprocal %282 {approx = true} : vector<16x1xf32> -> vector<16x1xf32>
    %284 = vector.broadcast %283 : vector<16x1xf32> to vector<16x16xf32>
    %285 = arith.mulf %278, %284 : vector<16x16xf32>
    %c0_i32_94 = arith.constant 0 : i32
    %286 = vector.broadcast %c0_i32_94 : i32 to vector<1x16xi32>
    %287 = arith.cmpi sge, %262, %286 : vector<1x16xi32>
    %c8_i32_95 = arith.constant 8 : i32
    %288 = vector.broadcast %c8_i32_95 : i32 to vector<1x16xi32>
    %289 = arith.cmpi slt, %262, %288 : vector<1x16xi32>
    %290 = arith.andi %287, %289 : vector<1x16xi1>
    %cst_96 = arith.constant 1.000000e+00 : f32
    %cst_97 = arith.constant 0.000000e+00 : f32
    %291 = vector.broadcast %cst_96 : f32 to vector<1x16xf32>
    %292 = vector.broadcast %cst_97 : f32 to vector<1x16xf32>
    %293 = arith.select %290, %291, %292 : vector<1x16xi1>, vector<1x16xf32>
    %294 = vector.broadcast %293 : vector<1x16xf32> to vector<16x16xf32>
    %295 = arith.mulf %260, %294 : vector<16x16xf32>
    %cst_98 = arith.constant dense<0.000000e+00> : vector<16x16xf32>
    %296 = tpu.matmul %285, %295, %cst_98 {dimension_numbers = #tpu.dot_dimension_numbers<[1], [0], [0], [1], [0, 0, 1, 1], [], []>} : vector<16x16xf32>, vector<16x16xf32>, vector<16x16xf32> -> vector<16x16xf32>
    %297 = vector.extract_strided_slice %259 {offsets = [0, 17], sizes = [16, 1], strides = [1, 1]} : vector<16x18xf32> to vector<16x1xf32>
    %298 = vector.extract_strided_slice %261 {offsets = [1, 0], sizes = [1, 16], strides = [1, 1]} : vector<2x16xf32> to vector<1x16xf32>
    %299 = vector.broadcast %297 : vector<16x1xf32> to vector<16x16xf32>
    %300 = vector.broadcast %298 : vector<1x16xf32> to vector<16x16xf32>
    %301 = arith.addf %299, %300 : vector<16x16xf32>
    %cst_99 = arith.constant 0.000000e+00 : f32
    %302 = vector.broadcast %cst_99 : f32 to vector<16x16xf32>
    %303 = arith.cmpf ogt, %301, %302 : vector<16x16xf32>
    %cst_100 = arith.constant 2.000000e-01 : f32
    %304 = vector.broadcast %cst_100 : f32 to vector<16x16xf32>
    %305 = arith.mulf %304, %301 : vector<16x16xf32>
    %306 = arith.select %303, %301, %305 : vector<16x16xi1>, vector<16x16xf32>
    %307 = arith.addf %306, %171 : vector<16x16xf32>
    %cst_101 = arith.constant dense<0xFF800000> : vector<16xf32>
    %308 = vector.multi_reduction <maximumf>, %307, %cst_101 [1] : vector<16x16xf32> to vector<16xf32>
    %309 = vector.shape_cast %308 : vector<16xf32> to vector<16x1xf32>
    %310 = vector.broadcast %309 : vector<16x1xf32> to vector<16x16xf32>
    %311 = arith.subf %307, %310 : vector<16x16xf32>
    %312 = math.exp %311 : vector<16x16xf32>
    %cst_102 = arith.constant dense<0.000000e+00> : vector<16xf32>
    %313 = vector.multi_reduction <add>, %312, %cst_102 [1] : vector<16x16xf32> to vector<16xf32>
    %314 = vector.shape_cast %313 : vector<16xf32> to vector<16x1xf32>
    %cst_103 = arith.constant 1.000000e-30 : f32
    %315 = vector.broadcast %cst_103 : f32 to vector<16x1xf32>
    %316 = arith.maximumf %314, %315 : vector<16x1xf32>
    %317 = tpu.reciprocal %316 {approx = true} : vector<16x1xf32> -> vector<16x1xf32>
    %318 = vector.broadcast %317 : vector<16x1xf32> to vector<16x16xf32>
    %319 = arith.mulf %312, %318 : vector<16x16xf32>
    %c8_i32_104 = arith.constant 8 : i32
    %320 = vector.broadcast %c8_i32_104 : i32 to vector<1x16xi32>
    %321 = arith.cmpi sge, %262, %320 : vector<1x16xi32>
    %c16_i32_105 = arith.constant 16 : i32
    %322 = vector.broadcast %c16_i32_105 : i32 to vector<1x16xi32>
    %323 = arith.cmpi slt, %262, %322 : vector<1x16xi32>
    %324 = arith.andi %321, %323 : vector<1x16xi1>
    %cst_106 = arith.constant 1.000000e+00 : f32
    %cst_107 = arith.constant 0.000000e+00 : f32
    %325 = vector.broadcast %cst_106 : f32 to vector<1x16xf32>
    %326 = vector.broadcast %cst_107 : f32 to vector<1x16xf32>
    %327 = arith.select %324, %325, %326 : vector<1x16xi1>, vector<1x16xf32>
    %328 = vector.broadcast %327 : vector<1x16xf32> to vector<16x16xf32>
    %329 = arith.mulf %260, %328 : vector<16x16xf32>
    %cst_108 = arith.constant dense<0.000000e+00> : vector<16x16xf32>
    %330 = tpu.matmul %319, %329, %cst_108 {dimension_numbers = #tpu.dot_dimension_numbers<[1], [0], [0], [1], [0, 0, 1, 1], [], []>} : vector<16x16xf32>, vector<16x16xf32>, vector<16x16xf32> -> vector<16x16xf32>
    %331 = arith.addf %296, %330 : vector<16x16xf32>
    %332 = vector.broadcast %177 : vector<1x16xf32> to vector<16x16xf32>
    %333 = arith.addf %331, %332 : vector<16x16xf32>
    %cst_109 = arith.constant 0.000000e+00 : f32
    %334 = vector.broadcast %cst_109 : f32 to vector<16x16xf32>
    %335 = arith.cmpf ogt, %333, %334 : vector<16x16xf32>
    %336 = math.exp %333 : vector<16x16xf32>
    %cst_110 = arith.constant 1.000000e+00 : f32
    %337 = vector.broadcast %cst_110 : f32 to vector<16x16xf32>
    %338 = arith.subf %336, %337 : vector<16x16xf32>
    %339 = arith.select %335, %333, %338 : vector<16x16xi1>, vector<16x16xf32>
    %c144 = arith.constant 144 : index
    %c0_111 = arith.constant 0 : index
    %340 = vector.load %arg5[%c144, %c0_111] : memref<288x128xf32, #tpu.memory_space<vmem>>, vector<2x16xf32>
    %c152 = arith.constant 152 : index
    %c0_112 = arith.constant 0 : index
    %341 = vector.load %arg5[%c152, %c0_112] : memref<288x128xf32, #tpu.memory_space<vmem>>, vector<2x16xf32>
    %342 = vector.extract_strided_slice %340 {offsets = [0, 0], sizes = [1, 16], strides = [1, 1]} : vector<2x16xf32> to vector<1x16xf32>
    %343 = vector.broadcast %342 : vector<1x16xf32> to vector<16x16xf32>
    %344 = arith.mulf %169, %343 : vector<16x16xf32>
    %345 = vector.extract_strided_slice %340 {offsets = [1, 0], sizes = [1, 16], strides = [1, 1]} : vector<2x16xf32> to vector<1x16xf32>
    %346 = vector.broadcast %345 : vector<1x16xf32> to vector<16x16xf32>
    %347 = arith.addf %344, %346 : vector<16x16xf32>
    %348 = vector.extract_strided_slice %341 {offsets = [0, 0], sizes = [1, 16], strides = [1, 1]} : vector<2x16xf32> to vector<1x16xf32>
    %349 = vector.broadcast %348 : vector<1x16xf32> to vector<16x16xf32>
    %350 = arith.mulf %339, %349 : vector<16x16xf32>
    %351 = vector.extract_strided_slice %341 {offsets = [1, 0], sizes = [1, 16], strides = [1, 1]} : vector<2x16xf32> to vector<1x16xf32>
    %352 = vector.broadcast %351 : vector<1x16xf32> to vector<16x16xf32>
    %353 = arith.addf %350, %352 : vector<16x16xf32>
    %c176 = arith.constant 176 : index
    %c0_113 = arith.constant 0 : index
    %354 = vector.load %arg5[%c176, %c0_113] : memref<288x128xf32, #tpu.memory_space<vmem>>, vector<3x8xf32>
    %c200 = arith.constant 200 : index
    %c0_114 = arith.constant 0 : index
    %355 = vector.load %arg5[%c200, %c0_114] : memref<288x128xf32, #tpu.memory_space<vmem>>, vector<3x8xf32>
    %c160 = arith.constant 160 : index
    %c0_115 = arith.constant 0 : index
    %356 = vector.load %arg5[%c160, %c0_115] : memref<288x128xf32, #tpu.memory_space<vmem>>, vector<16x8xf32>
    %357 = vector.extract_strided_slice %354 {offsets = [0, 0], sizes = [1, 8], strides = [1, 1]} : vector<3x8xf32> to vector<1x8xf32>
    %358 = vector.extract_strided_slice %354 {offsets = [1, 0], sizes = [1, 8], strides = [1, 1]} : vector<3x8xf32> to vector<1x8xf32>
    %359 = vector.extract_strided_slice %354 {offsets = [2, 0], sizes = [1, 1], strides = [1, 1]} : vector<3x8xf32> to vector<1x1xf32>
    %cst_116 = arith.constant dense<0.000000e+00> : vector<16x8xf32>
    %360 = tpu.matmul %347, %356, %cst_116 {dimension_numbers = #tpu.dot_dimension_numbers<[1], [0], [0], [1], [0, 0, 1, 1], [], []>} : vector<16x16xf32>, vector<16x8xf32>, vector<16x8xf32> -> vector<16x8xf32>
    %361 = vector.broadcast %357 : vector<1x8xf32> to vector<16x8xf32>
    %362 = arith.addf %360, %361 : vector<16x8xf32>
    %cst_117 = arith.constant 0.000000e+00 : f32
    %363 = vector.broadcast %cst_117 : f32 to vector<16x8xf32>
    %364 = arith.maximumf %362, %363 : vector<16x8xf32>
    %365 = vector.broadcast %358 : vector<1x8xf32> to vector<16x8xf32>
    %366 = arith.mulf %364, %365 : vector<16x8xf32>
    %cst_118 = arith.constant dense<0.000000e+00> : vector<16xf32>
    %367 = vector.multi_reduction <add>, %366, %cst_118 [1] : vector<16x8xf32> to vector<16xf32>
    %368 = vector.shape_cast %367 : vector<16xf32> to vector<16x1xf32>
    %369 = vector.broadcast %359 : vector<1x1xf32> to vector<16x1xf32>
    %370 = arith.addf %368, %369 : vector<16x1xf32>
    %cst_119 = arith.constant 0.000000e+00 : f32
    %371 = vector.broadcast %cst_119 : f32 to vector<16x1xf32>
    %372 = arith.subf %371, %370 : vector<16x1xf32>
    %373 = math.exp %372 : vector<16x1xf32>
    %cst_120 = arith.constant 1.000000e+00 : f32
    %374 = vector.broadcast %cst_120 : f32 to vector<16x1xf32>
    %375 = arith.addf %374, %373 : vector<16x1xf32>
    %376 = tpu.reciprocal %375 {approx = true} : vector<16x1xf32> -> vector<16x1xf32>
    %c184 = arith.constant 184 : index
    %c0_121 = arith.constant 0 : index
    %377 = vector.load %arg5[%c184, %c0_121] : memref<288x128xf32, #tpu.memory_space<vmem>>, vector<16x8xf32>
    %378 = vector.extract_strided_slice %355 {offsets = [0, 0], sizes = [1, 8], strides = [1, 1]} : vector<3x8xf32> to vector<1x8xf32>
    %379 = vector.extract_strided_slice %355 {offsets = [1, 0], sizes = [1, 8], strides = [1, 1]} : vector<3x8xf32> to vector<1x8xf32>
    %380 = vector.extract_strided_slice %355 {offsets = [2, 0], sizes = [1, 1], strides = [1, 1]} : vector<3x8xf32> to vector<1x1xf32>
    %cst_122 = arith.constant dense<0.000000e+00> : vector<16x8xf32>
    %381 = tpu.matmul %353, %377, %cst_122 {dimension_numbers = #tpu.dot_dimension_numbers<[1], [0], [0], [1], [0, 0, 1, 1], [], []>} : vector<16x16xf32>, vector<16x8xf32>, vector<16x8xf32> -> vector<16x8xf32>
    %382 = vector.broadcast %378 : vector<1x8xf32> to vector<16x8xf32>
    %383 = arith.addf %381, %382 : vector<16x8xf32>
    %cst_123 = arith.constant 0.000000e+00 : f32
    %384 = vector.broadcast %cst_123 : f32 to vector<16x8xf32>
    %385 = arith.maximumf %383, %384 : vector<16x8xf32>
    %386 = vector.broadcast %379 : vector<1x8xf32> to vector<16x8xf32>
    %387 = arith.mulf %385, %386 : vector<16x8xf32>
    %cst_124 = arith.constant dense<0.000000e+00> : vector<16xf32>
    %388 = vector.multi_reduction <add>, %387, %cst_124 [1] : vector<16x8xf32> to vector<16xf32>
    %389 = vector.shape_cast %388 : vector<16xf32> to vector<16x1xf32>
    %390 = vector.broadcast %380 : vector<1x1xf32> to vector<16x1xf32>
    %391 = arith.addf %389, %390 : vector<16x1xf32>
    %cst_125 = arith.constant 0.000000e+00 : f32
    %392 = vector.broadcast %cst_125 : f32 to vector<16x1xf32>
    %393 = arith.subf %392, %391 : vector<16x1xf32>
    %394 = math.exp %393 : vector<16x1xf32>
    %cst_126 = arith.constant 1.000000e+00 : f32
    %395 = vector.broadcast %cst_126 : f32 to vector<16x1xf32>
    %396 = arith.addf %395, %394 : vector<16x1xf32>
    %397 = tpu.reciprocal %396 {approx = true} : vector<16x1xf32> -> vector<16x1xf32>
    %398 = arith.maximumf %376, %397 : vector<16x1xf32>
    %399 = arith.subf %376, %398 : vector<16x1xf32>
    %400 = math.exp %399 : vector<16x1xf32>
    %401 = arith.subf %397, %398 : vector<16x1xf32>
    %402 = math.exp %401 : vector<16x1xf32>
    %403 = arith.addf %400, %402 : vector<16x1xf32>
    %404 = tpu.reciprocal %403 {approx = true} : vector<16x1xf32> -> vector<16x1xf32>
    %405 = arith.mulf %400, %404 : vector<16x1xf32>
    %406 = vector.broadcast %405 : vector<16x1xf32> to vector<16x16xf32>
    %407 = arith.mulf %347, %406 : vector<16x16xf32>
    %408 = arith.mulf %402, %404 : vector<16x1xf32>
    %409 = vector.broadcast %408 : vector<16x1xf32> to vector<16x16xf32>
    %410 = arith.mulf %353, %409 : vector<16x16xf32>
    %c208 = arith.constant 208 : index
    %c0_127 = arith.constant 0 : index
    %411 = vector.load %arg5[%c208, %c0_127] : memref<288x128xf32, #tpu.memory_space<vmem>>, vector<16x16xf32>
    %cst_128 = arith.constant dense<0.000000e+00> : vector<16x16xf32>
    %412 = tpu.matmul %407, %411, %cst_128 {dimension_numbers = #tpu.dot_dimension_numbers<[1], [0], [0], [1], [0, 0, 1, 1], [], []>} : vector<16x16xf32>, vector<16x16xf32>, vector<16x16xf32> -> vector<16x16xf32>
    %c224 = arith.constant 224 : index
    %c0_129 = arith.constant 0 : index
    %413 = vector.load %arg5[%c224, %c0_129] : memref<288x128xf32, #tpu.memory_space<vmem>>, vector<16x16xf32>
    %cst_130 = arith.constant dense<0.000000e+00> : vector<16x16xf32>
    %414 = tpu.matmul %410, %413, %cst_130 {dimension_numbers = #tpu.dot_dimension_numbers<[1], [0], [0], [1], [0, 0, 1, 1], [], []>} : vector<16x16xf32>, vector<16x16xf32>, vector<16x16xf32> -> vector<16x16xf32>
    %415 = arith.addf %412, %414 : vector<16x16xf32>
    %c240 = arith.constant 240 : index
    %c0_131 = arith.constant 0 : index
    %416 = vector.load %arg5[%c240, %c0_131] : memref<288x128xf32, #tpu.memory_space<vmem>>, vector<1x16xf32>
    %417 = vector.broadcast %416 : vector<1x16xf32> to vector<16x16xf32>
    %418 = arith.addf %415, %417 : vector<16x16xf32>
    %cst_132 = arith.constant 0.000000e+00 : f32
    %419 = vector.broadcast %cst_132 : f32 to vector<16x16xf32>
    %420 = arith.cmpf ogt, %418, %419 : vector<16x16xf32>
    %421 = math.exp %418 : vector<16x16xf32>
    %cst_133 = arith.constant 1.000000e+00 : f32
    %422 = vector.broadcast %cst_133 : f32 to vector<16x16xf32>
    %423 = arith.subf %421, %422 : vector<16x16xf32>
    %424 = arith.select %420, %418, %423 : vector<16x16xi1>, vector<16x16xf32>
    %c248 = arith.constant 248 : index
    %c0_134 = arith.constant 0 : index
    %425 = vector.load %arg5[%c248, %c0_134] : memref<288x128xf32, #tpu.memory_space<vmem>>, vector<16x8xf32>
    %cst_135 = arith.constant dense<0.000000e+00> : vector<16x8xf32>
    %426 = tpu.matmul %424, %425, %cst_135 {dimension_numbers = #tpu.dot_dimension_numbers<[1], [0], [0], [1], [0, 0, 1, 1], [], []>} : vector<16x16xf32>, vector<16x8xf32>, vector<16x8xf32> -> vector<16x8xf32>
    %c264 = arith.constant 264 : index
    %c0_136 = arith.constant 0 : index
    %427 = vector.load %arg5[%c264, %c0_136] : memref<288x128xf32, #tpu.memory_space<vmem>>, vector<1x8xf32>
    %428 = vector.broadcast %427 : vector<1x8xf32> to vector<16x8xf32>
    %429 = arith.addf %426, %428 : vector<16x8xf32>
    %cst_137 = arith.constant 0.000000e+00 : f32
    %430 = vector.broadcast %cst_137 : f32 to vector<16x8xf32>
    %431 = arith.cmpf ogt, %429, %430 : vector<16x8xf32>
    %432 = math.exp %429 : vector<16x8xf32>
    %cst_138 = arith.constant 1.000000e+00 : f32
    %433 = vector.broadcast %cst_138 : f32 to vector<16x8xf32>
    %434 = arith.subf %432, %433 : vector<16x8xf32>
    %435 = arith.select %431, %429, %434 : vector<16x8xi1>, vector<16x8xf32>
    %c272 = arith.constant 272 : index
    %c0_139 = arith.constant 0 : index
    %436 = vector.load %arg5[%c272, %c0_139] : memref<288x128xf32, #tpu.memory_space<vmem>>, vector<8x128xf32>
    %cst_140 = arith.constant dense<0.000000e+00> : vector<16x128xf32>
    %437 = tpu.matmul %435, %436, %cst_140 {dimension_numbers = #tpu.dot_dimension_numbers<[1], [0], [0], [1], [0, 0, 1, 1], [], []>} : vector<16x8xf32>, vector<8x128xf32>, vector<16x128xf32> -> vector<16x128xf32>
    %c280 = arith.constant 280 : index
    %c0_141 = arith.constant 0 : index
    %438 = vector.load %arg5[%c280, %c0_141] : memref<288x128xf32, #tpu.memory_space<vmem>>, vector<1x128xf32>
    %439 = vector.broadcast %438 : vector<1x128xf32> to vector<16x128xf32>
    %440 = arith.addf %437, %439 : vector<16x128xf32>
    %441 = tpu.iota {dimensions = array<i32: 1>} : vector<1x128xi32>
    %c4_i32 = arith.constant 4 : i32
    %442 = vector.broadcast %c4_i32 : i32 to vector<1x128xi32>
    %443 = arith.cmpi slt, %441, %442 : vector<1x128xi32>
    %cst_142 = arith.constant -1.000000e+30 : f32
    %444 = vector.shape_cast %443 : vector<1x128xi1> to vector<1x128xi1>
    %445 = vector.broadcast %444 : vector<1x128xi1> to vector<16x128xi1>
    %446 = vector.broadcast %cst_142 : f32 to vector<16x128xf32>
    %447 = arith.select %445, %440, %446 : vector<16x128xi1>, vector<16x128xf32>
    %cst_143 = arith.constant dense<0xFF800000> : vector<16xf32>
    %448 = vector.multi_reduction <maximumf>, %447, %cst_143 [1] : vector<16x128xf32> to vector<16xf32>
    %449 = vector.shape_cast %448 : vector<16xf32> to vector<16x1xf32>
    %450 = vector.broadcast %449 : vector<16x1xf32> to vector<16x128xf32>
    %451 = arith.subf %447, %450 : vector<16x128xf32>
    %452 = math.exp %451 : vector<16x128xf32>
    %cst_144 = arith.constant dense<0.000000e+00> : vector<16xf32>
    %453 = vector.multi_reduction <add>, %452, %cst_144 [1] : vector<16x128xf32> to vector<16xf32>
    %454 = vector.shape_cast %453 : vector<16xf32> to vector<16x1xf32>
    %455 = math.log %454 : vector<16x1xf32>
    %456 = vector.broadcast %455 : vector<16x1xf32> to vector<16x128xf32>
    %457 = arith.subf %451, %456 : vector<16x128xf32>
    %c0_145 = arith.constant 0 : index
    %c0_146 = arith.constant 0 : index
    %458 = vector.load %arg6[%c0_145, %c0_146] : memref<16x128xf32, #tpu.memory_space<vmem>>, vector<16x128xf32>
    tpu.vector_store %arg6[%c0_145, %c0_146], %457 {strides = array<i32>} : memref<16x128xf32, #tpu.memory_space<vmem>>, vector<16x128xf32>,
    return
  }
  func.func @transform_0(%arg0: i32) -> (i32, i32) {
    %c0_i32 = arith.constant 0 : i32
    %c0_i32_0 = arith.constant 0 : i32
    %c0_i32_1 = arith.constant 0 : i32
    return %c0_i32, %c0_i32_0 : i32, i32
  }
  func.func @transform_1(%arg0: i32) -> (i32, i32) {
    %c0_i32 = arith.constant 0 : i32
    %c0_i32_0 = arith.constant 0 : i32
    %c0_i32_1 = arith.constant 0 : i32
    return %c0_i32, %c0_i32_0 : i32, i32
  }
  func.func @transform_2(%arg0: i32) -> (i32, i32) {
    %c0_i32 = arith.constant 0 : i32
    %c0_i32_0 = arith.constant 0 : i32
    %c0_i32_1 = arith.constant 0 : i32
    return %c0_i32, %c0_i32_0 : i32, i32
  }
  func.func @transform_3(%arg0: i32) -> (i32, i32) {
    %c0_i32 = arith.constant 0 : i32
    %c0_i32_0 = arith.constant 0 : i32
    %c0_i32_1 = arith.constant 0 : i32
    return %c0_i32, %c0_i32_0 : i32, i32
  }
  func.func @transform_4(%arg0: i32) -> (i32, i32) {
    %c0_i32 = arith.constant 0 : i32
    %c0_i32_0 = arith.constant 0 : i32
    %c0_i32_1 = arith.constant 0 : i32
    return %c0_i32, %c0_i32_0 : i32, i32
  }
  func.func @transform_5(%arg0: i32) -> (i32, i32) {
    %c0_i32 = arith.constant 0 : i32
    %c0_i32_0 = arith.constant 0 : i32
    %c0_i32_1 = arith.constant 0 : i32
    return %c0_i32, %c0_i32_0 : i32, i32
  }
}

</mosaic_0001>

<bundles_post_ra>
// kernel: dhgat_forward.1
= control target key start
LH: loop header
LB: loop body
LE: loop exit
PB: predicated region body
PF: predicated region fallthrough
CT: control target
= control target key end

     0   :  { %10 = vsyncpa [#allocation3], 0  ;;  %s3458_s0 = inlined_call_operand.hbm [shape: f32[16,16], index: 0, kind: input, shape index: {}]   ;;  %s3459_s1 = inlined_call_operand.hbm [shape: f32[16,12], index: 1, kind: input, shape index: {}]   ;;  %s3460_s2 = inlined_call_operand.hbm [shape: f32[16,16], index: 2, kind: input, shape index: {}]   ;;  %s3461_s3 = inlined_call_operand.hbm [shape: f32[16,16], index: 3, kind: input, shape index: {}]   ;;  %s3462_s4 = inlined_call_operand.hbm [shape: f32[288,128], index: 4, kind: input, shape index: {}]   ;;  %s3463_s5 = inlined_call_operand.vmem [shape: f32[16,128], index: 5, kind: output, shape index: {}]  }
   0x1   :  { %11 = vsyncpa [#allocation5], 0 }
   0x2   :  { %12 = vsyncpa [#allocation8], 0  ;;  %s3132_s18 = smov [#allocation4]   ;;  %s3133_s20 = smov [#allocation7]  }
   0x3   :  { %s30_s19 = sshll.u32 %s3132_s18, 4  ;;  %s54_s21 = sshll.u32 %s3133_s20, 4  ;;  %s31_s19 = int_to_ptr.vmem [resolvable:$true] %s30_s19  ;;  %s55_s21 = int_to_ptr.vmem [resolvable:$true] %s54_s21 }
   0x4   :  { %s3034_s22 = scalar_lea.vmem %s31_s19, 256  ;;  %p3039_p1 = scmp.lt.s32.totalorder %s31_s19, %s31_s19 }
   0x5   :  { %p3035_p0 = scmp.ne.s32.totalorder %s31_s19, %s3034_s22  ;;  %p3040_p2 = scmp.lt.s32.totalorder %s3034_s22, %s3034_s22 }
   0x7   :  { %p3041_p3 = por %p3040_p2, %p3039_p1 }
   0x9   :  { %p3042_p4 = pnand %p3041_p3, %p3035_p0 }
   0xb   :  { %3045 = shalt.err (!%p3042_p4)
}
   0xc   :  { %s3134_s23 = smov 128   ;;  %s3135_s24 = smov 8  }
   0xd   :  { %36 = dma.hbm_to_vmem [thread:$0]  %s3459_s1, 256, %s31_s19, [#allocation5], %s3134_s23, %s3134_s23, %s3135_s24  }
   0xe   :  { %s3054_s27 = scalar_lea.vmem %s55_s21, 256  ;;  %p3059_p6 = scmp.lt.s32.totalorder %s55_s21, %s55_s21 }
   0xf   :  { %p3055_p5 = scmp.ne.s32.totalorder %s55_s21, %s3054_s27  ;;  %p3060_p7 = scmp.lt.s32.totalorder %s3054_s27, %s3054_s27 }
  0x11   :  { %p3061_p8 = por %p3060_p7, %p3059_p6 }
  0x13   :  { %p3062_p9 = pnand %p3061_p8, %p3055_p5 }
  0x15   :  { %3065 = shalt.err (!%p3062_p9)
}
  0x16   :  { %60 = dma.hbm_to_vmem [thread:$0]  %s3461_s3, 256, %s55_s21, [#allocation8], %s3134_s23, %s3134_s23, %s3135_s24  }
  0x17   :  { %s3136_s30 = smov [#allocation2]   ;;  %s3137_s7 = smov [#allocation6]  }
  0x18   :  { %s18_s6 = sshll.u32 %s3136_s30, 4  ;;  %s42_s8 = sshll.u32 %s3137_s7, 4  ;;  %s19_s6 = int_to_ptr.vmem [resolvable:$true] %s18_s6  ;;  %s43_s8 = int_to_ptr.vmem [resolvable:$true] %s42_s8 }
  0x19   :  { %s3074_s1 = scalar_lea.vmem %s19_s6, 256  ;;  %p3079_p11 = scmp.lt.s32.totalorder %s19_s6, %s19_s6 }
  0x1a   :  { %p3075_p10 = scmp.ne.s32.totalorder %s19_s6, %s3074_s1  ;;  %p3080_p12 = scmp.lt.s32.totalorder %s3074_s1, %s3074_s1 }
  0x1c   :  { %p3081_p13 = por %p3080_p12, %p3079_p11 }
  0x1e   :  { %p3082_p0 = pnand %p3081_p13, %p3075_p10 }
  0x20   :  { %3085 = shalt.err (!%p3082_p0)
}
  0x21   :  { %24 = dma.hbm_to_vmem [thread:$0]  %s3458_s0, 256, %s19_s6, [#allocation3], %s3134_s23, %s3134_s23, %s3135_s24  }
  0x22   :  { %s3094_s3 = scalar_lea.vmem %s43_s8, 256  ;;  %p3099_p2 = scmp.lt.s32.totalorder %s43_s8, %s43_s8 }
  0x23   :  { %p3095_p1 = scmp.ne.s32.totalorder %s43_s8, %s3094_s3  ;;  %p3100_p3 = scmp.lt.s32.totalorder %s3094_s3, %s3094_s3 }
  0x25   :  { %p3101_p4 = por %p3100_p3, %p3099_p2 }
  0x27   :  { %p3102_p5 = pnand %p3101_p4, %p3095_p1 }
  0x29   :  { %3105 = shalt.err (!%p3102_p5)
}
  0x2a   :  { %48 = dma.hbm_to_vmem [thread:$0]  %s3460_s2, 256, %s43_s8, [#allocation5], %s3134_s23, %s3134_s23, %s3135_s24  }
  0x2b   :  { %s3138_s13 = smov [#allocation9]  }
  0x2c   :  { %s66_s14 = sshll.u32 %s3138_s13, 4  ;;  %s67_s14 = int_to_ptr.vmem [resolvable:$true] %s66_s14 }
  0x2d   :  { %s3114_s15 = scalar_lea.vmem %s67_s14, 4608  ;;  %p3119_p7 = scmp.lt.s32.totalorder %s67_s14, %s67_s14 }
  0x2e   :  { %p3115_p6 = scmp.ne.s32.totalorder %s67_s14, %s3114_s15  ;;  %p3120_p8 = scmp.lt.s32.totalorder %s3114_s15, %s3114_s15 }
  0x30   :  { %p3121_p9 = por %p3120_p8, %p3119_p7 }
  0x32   :  { %p3122_p10 = pnand %p3121_p9, %p3115_p6 }
  0x34   :  { %3125 = shalt.err (!%p3122_p10)
}
  0x35   :  { %72 = dma.hbm_to_vmem [thread:$0]  %s3462_s4, 4608, %s67_s14, [#allocation8], %s3134_s23, %s3134_s23, %s3135_s24  }
  0x36   :  { %3126 = dma.done.wait [#allocation3], 256  }
  0x37   :  { %3127 = vsyncadd [#allocation3], 4294967040 }
  0x38   :  { %3128 = dma.done.wait [#allocation5], 512  }
  0x39   :  { %3129 = vsyncadd [#allocation5], 4294966784 }
  0x3a   :  { %3130 = dma.done.wait [#allocation8], 4864  }
  0x3b   :  { %3131 = vsyncadd [#allocation8], 4294962432  ;;  %v3139_v0 = vmov 0.0   ;;  %vm3140_vm0 = vmmov 0   ;;  %vm102_vm1 = vcmask 130048   ;;  %v93_v1 = vld [vmem:[#allocation9 + $0x8] sm:$0xff]  ;;  %v257_v8 = vlaneseq }
  0x3c   :  { %2728 = vmatprep.subr.mxu1 %v3139_v0  ;;  %2732 = vmatprep.mubr.msk.f32.mxu1 %vm3140_vm0, %v3139_v0  ;;  %v92_v2 = vld [vmem:[#allocation9] sm:$0xff]  ;;  %v89_v4 = vld [vmem:[#allocation2 + $0x8] sm:$0xff]  ;;  %v94_v5 = vld [vmem:[#allocation9 + $0x10] sm:$0x3]  ;;  %v3141_v6 = vmov 33   ;;  %v3142_v7 = vmov 32  }
  0x3d   :  { %v88_v3 = vld [vmem:[#allocation2] sm:$0xff]  ;;  %2721 = vmatprep.subr.mxu0 %v93_v1  ;;  %2729 = vmatpush3.xpose.msk.msra.mxu1 %vm102_vm1, %v89_v4  ;;  %v3215_v9 = vand.u32 127, %v257_v8  ;;  %v3235_v19 = vshrl.u32 %v257_v8, 7  ;;  %v3248_v40 = vld [vmem:[#allocation6 + $0x8] sm:$0xff]  ;;  %vm543_vm10 = vcmask 261120  }
  0x3e   :  { %2725 = vmatprep.mubr.msk.f32.mxu0 %vm102_vm1, %v88_v3  ;;  %2722 = vmatpush3.msra.mxu0 %v93_v1  ;;  %v3245_v31 = vld [vmem:[#allocation6] sm:$0xff] }
  0x3f   :  { %2723 = vmatprep.subr.mxu0 %v92_v2  ;;  %2730 = vmatprep.subr.mxu1 %v3139_v0  ;;  %vm359_vm2 = vcmp.ge.s32.totalorder %v3215_v9, 16  ;;  %vm360_vm3 = vcmp.lt.s32.totalorder %v3215_v9, 32  ;;  %vm308_vm5 = vcmp.lt.s32.totalorder %v3215_v9, 16  ;;  %v3238_v20 = vsub.s32 0, %v3235_v19 }
  0x40   :  { %2724 = vmatpush3.msra.mxu0 %v92_v2  ;;  %2891 = vset.pattern.permute.xlu0 %v3141_v6  ;;  %vm361_vm4 = vmand %vm359_vm2, %vm360_vm3  ;;  %v3226_v14 = vsel %vm308_vm5, 1.0, %v3139_v0  ;;  %v3241_v21 = vsub.s32 1, %v3235_v19  ;;  %vm797_vm13 = vcmp.ge.s32.totalorder %v3215_v9, 8  ;;  %vm746_vm15 = vcmp.lt.s32.totalorder %v3215_v9, 8 }
  0x41   :  { %2726 = vmatmul.mubr.msk.f32.vlgmr.msra.gmra.mxu0 %vm102_vm1, %v89_v4  ;;  %2731 = vmatpush3.xpose.msk.msra.mxu1 %vm102_vm1, %v88_v3  ;;  %v362_v10 = vsel %vm361_vm4, 1.0, %v3139_v0  ;;  %vm798_vm14 = vmand %vm797_vm13, %vm308_vm5 }
  0x42   :  { %2892 = vset.pattern.permute.xlu1 %v3142_v7 }
  0x44   :  { %2733 = vmatmul.mubr.msk.f32.vlgmr.msra.gmra.mxu1 %vm102_vm1, %v94_v5 }
 0x101   :  { %v2727_v11 = vpop.f32.mrf.mxu0 }
 0x102   :  { %v364_v12 = vmul.f32 %v2727_v11, %v362_v10  ;;  %v3232_v17 = vmul.f32 %v2727_v11, %v3226_v14 }
 0x103   :  { %v3221_v13 = vpop.f32.mrf.mxu0 }
 0x104   :  { %2735 = vmatprep.subr.mxu0 %v364_v12  ;;  %261 = vperm.xlu1 %2892, %v3221_v13   ;;  %v363_v15 = vmul.f32 %v362_v10, %v3221_v13  ;;  %v253_v16 = vpop.f32.mrf.mxu1 }
 0x105   :  { %314 = vperm.xlu0 %2891, %v3221_v13   ;;  %2736 = vmatpush3.msra.mxu0 %v364_v12  ;;  %v272_v22 = vrot.slane %v253_v16, %v3238_v20  ;;  %v324_v23 = vrot.slane %v253_v16, %v3241_v21 }
 0x106   :  { %2737 = vmatprep.subr.mxu0 %v363_v15  ;;  %v2734_v18 = vpop.f32.mrf.mxu1 }
 0x107   :  { %2738 = vmatpush3.msra.mxu0 %v363_v15 }
 0x108   :  { %266 = vperm.xlu1 %2892, %v2727_v11   ;;  %2742 = vmatprep.subr.mxu0 %v3232_v17 }
 0x109   :  { %318 = vperm.xlu0 %2891, %v2727_v11  }
 0x17f   :  { %v262_v24 = vpop.permute.xlu1 %261 }
 0x180   :  { %v273_v25 = vadd.f32 %v272_v22, %v262_v24  ;;  %v315_v26 = vpop.permute.xlu0 %314 }
 0x181   :  { %v325_v27 = vadd.f32 %v324_v23, %v315_v26 }
 0x182   :  { %vm275_vm6 = vcmp.gt.f32.partialorder %v273_v25, 0.0  ;;  %v277_v28 = vmul.f32 0.2, %v273_v25 }
 0x183   :  { %vm327_vm7 = vcmp.gt.f32.partialorder %v325_v27, 0.0  ;;  %v329_v29 = vmul.f32 0.2, %v325_v27  ;;  %v267_v30 = vpop.permute.xlu1 %266 }
 0x184   :  { %v274_v32 = vadd.f32 %v272_v22, %v267_v30  ;;  %v319_v33 = vpop.permute.xlu0 %318  ;;  %v279_v36 = vsel %vm275_vm6, %v273_v25, %v277_v28  ;;  %v311_v28 = vmul.f32 %v3226_v14, %v3221_v13  ;;  %v97_v13 = vld [vmem:[#allocation9 + $0x28] sm:$0xff]  ;;  %v96_v14 = vld [vmem:[#allocation9 + $0x20] sm:$0xff]  ;;  %vm999_vm6 = vcmask 1043456  }
 0x185   :  { %v326_v34 = vadd.f32 %v324_v23, %v319_v33  ;;  %v331_v35 = vsel %vm327_vm7, %v325_v27, %v329_v29  ;;  %v281_v42 = vadd.f32 %v279_v36, %v3245_v31  ;;  %v98_v33 = vld [vmem:[#allocation9 + $0x30] sm:$0xff]  ;;  %v2577_v36 = vld [vmem:[#allocation9 + $0x18] ss:$0 sm:$0xff]  ;;  %vm992_vm7 = vcmask 97280  }
 0x186   :  { %vm276_vm8 = vcmp.gt.f32.partialorder %v274_v32, 0.0  ;;  %v278_v37 = vmul.f32 0.2, %v274_v32  ;;  %v333_v38 = vadd.f32 %v331_v35, %v3245_v31 }
 0x187   :  { %vm328_vm9 = vcmp.gt.f32.partialorder %v326_v34, 0.0  ;;  %v330_v39 = vmul.f32 0.2, %v326_v34  ;;  %v283_v46 = vsel %vm102_vm1, %v281_v42, -inf }
 0x188   :  { %v335_v41 = vsel %vm102_vm1, %v333_v38, -inf  ;;  %v280_v44 = vsel %vm276_vm8, %v274_v32, %v278_v37  ;;  %v99_v32 = vld [vmem:[#allocation9 + $0x38] sm:$0xff] }
 0x189   :  { %336 = vmax.xlane.f32.xlu0 %v335_v41  ;;  %v332_v43 = vsel %vm328_vm9, %v326_v34, %v330_v39  ;;  %v282_v48 = vadd.f32 %v280_v44, %v3248_v40  ;;  %2749 = vmatprep.subr.mxu1 %v99_v32 }
 0x18a   :  { %v334_v45 = vadd.f32 %v332_v43, %v3248_v40  ;;  %2750 = vmatpush3.msra.mxu1 %v99_v32 }
 0x18b   :  { %v286_v49 = vsel %vm102_vm1, %v282_v48, -inf  ;;  %2751 = vmatprep.subr.mxu1 %v98_v33 }
 0x18c   :  { %v338_v47 = vsel %vm102_vm1, %v334_v45, -inf  ;;  %2752 = vmatpush3.msra.mxu1 %v98_v33 }
 0x18d   :  { %284 = vmax.xlane.f32.xlu0 %v283_v46  ;;  %339 = vmax.xlane.f32.xlu1 %v338_v47 }
 0x18e   :  { %2753 = vmatprep.subr.mxu1 %v97_v13 }
 0x18f   :  { %2754 = vmatpush3.msra.mxu1 %v97_v13 }
 0x190   :  { %2755 = vmatprep.subr.mxu1 %v96_v14 }
 0x191   :  { %287 = vmax.xlane.f32.xlu0 %v286_v49  ;;  %2756 = vmatpush3.msra.mxu1 %v96_v14 }
 0x212   :  { %v337_v50 = vpop.xlane.xlu0 %336 }
 0x213   :  { %v341_v51 = vsub.f32 %v333_v38, %v337_v50 }
 0x215   :  { %v343_v52 = vmul.f32 1.442695, %v341_v51 }
 0x216   :  { %v340_v53 = vpop.xlane.xlu1 %339  ;;  %v285_v54 = vpop.xlane.xlu0 %284 }
 0x217   :  { %2902 = vpow2.f32 %v343_v52  ;;  %v342_v55 = vsub.f32 %v334_v45, %v340_v53  ;;  %v289_v56 = vsub.f32 %v281_v42, %v285_v54  ;;  %v100_v52 = vld [vmem:[#allocation9 + $0x40] sm:$0x3]  ;;  %v3279_v53 = vsel %vm798_vm14, 1.0, %v3139_v0 }
 0x218   :  { %v3282_v54 = vsel %vm746_vm15, 1.0, %v3139_v0 }
 0x219   :  { %v345_v57 = vmul.f32 1.442695, %v342_v55  ;;  %v291_v58 = vmul.f32 1.442695, %v289_v56 }
 0x21a   :  { %v288_v59 = vpop.xlane.xlu0 %287 }
 0x21b   :  { %2904 = vpow2.f32 %v345_v57  ;;  %v290_v60 = vsub.f32 %v282_v48, %v288_v59 }
 0x21c   :  { %2906 = vpow2.f32 %v291_v58 }
 0x21d   :  { %v293_v61 = vmul.f32 1.442695, %v290_v60 }
 0x21f   :  { %2908 = vpow2.f32 %v293_v61 }
 0x224   :  { %v2903_v62 = vpop.eup %2902 }
 0x225   :  { %v347_v63 = vsel %vm102_vm1, %v2903_v62, 0.0 }
 0x226   :  { %348 = vadd.xlane.f32.xlu1 %v347_v63  ;;  %v3144_v63 = vmov 16  }
 0x228   :  { %v2905_v1 = vpop.eup %2904 }
 0x229   :  { %v2907_v2 = vpop.eup %2906  ;;  %v350_v3 = vsel %vm102_vm1, %v2905_v1, 0.0 }
 0x22a   :  { %351 = vadd.xlane.f32.xlu0 %v350_v3  ;;  %v295_v4 = vsel %vm102_vm1, %v2907_v2, 0.0 }
 0x22b   :  { %296 = vadd.xlane.f32.xlu1 %v295_v4 }
 0x22c   :  { %v2909_v5 = vpop.eup %2908 }
 0x22d   :  { %v298_v6 = vsel %vm102_vm1, %v2909_v5, 0.0 }
 0x22e   :  { %299 = vadd.xlane.f32.xlu0 %v298_v6 }
 0x2af   :  { %v349_v7 = vpop.xlane.xlu1 %348 }
 0x2b0   :  { %v353_v8 = vmax.f32 %v349_v7, 1e-30 }
 0x2b2   :  { %2910 = vrcp.f32 %v353_v8 }
 0x2b3   :  { %v352_v10 = vpop.xlane.xlu0 %351 }
 0x2b4   :  { %v297_v11 = vpop.xlane.xlu1 %296  ;;  %v354_v12 = vmax.f32 %v352_v10, 1e-30 }
 0x2b5   :  { %v301_v15 = vmax.f32 %v297_v11, 1e-30 }
 0x2b6   :  { %2912 = vrcp.f32 %v354_v12 }
 0x2b7   :  { %2914 = vrcp.f32 %v301_v15  ;;  %v300_v16 = vpop.xlane.xlu0 %299 }
 0x2b8   :  { %v302_v18 = vmax.f32 %v300_v16, 1e-30 }
 0x2ba   :  { %2916 = vrcp.f32 %v302_v18 }
 0x2bf   :  { %v2911_v22 = vpop.eup %2910 }
 0x2c0   :  { %v357_v23 = vmul.f32 %v2911_v22, %v2903_v62 }
 0x2c2   :  { %2739 = vmatprep.mubr.msk.f32.mxu0 %vm102_vm1, %v357_v23 }
 0x2c3   :  { %v2913_v24 = vpop.eup %2912 }
 0x2c4   :  { %v2915_v25 = vpop.eup %2914  ;;  %v358_v26 = vmul.f32 %v2913_v24, %v2905_v1 }
 0x2c5   :  { %v305_v27 = vmul.f32 %v2915_v25, %v2907_v2 }
 0x2c6   :  { %2740 = vmatmul.mubr.msk.f32.vlgmr.msra.gmra.mxu0 %vm102_vm1, %v358_v26 }
 0x2c7   :  { %v2917_v29 = vpop.eup %2916  ;;  %2743 = vmatpush3.msra.mxu0 %v3232_v17  ;;  %2746 = vmatprep.mubr.msk.f32.mxu0 %vm102_vm1, %v305_v27  ;;  %v3143_v17 = vmov 17  }
 0x2c8   :  { %2744 = vmatprep.subr.mxu0 %v311_v28  ;;  %v306_v30 = vmul.f32 %v2917_v29, %v2909_v5  ;;  %2894 = vset.pattern.permute.xlu0 %v3143_v17 }
 0x2c9   :  { %2745 = vmatpush3.msra.mxu0 %v311_v28  ;;  %2893 = vset.pattern.permute.xlu1 %v3143_v17 }
 0x2ca   :  { %2747 = vmatmul.mubr.msk.f32.vlgmr.msra.gmra.mxu0 %vm102_vm1, %v306_v30  ;;  %2760 = vmatprep.subr.mxu0 %v3139_v0 }
 0x2cb   :  { %2764 = vmatprep.mubr.msk.f32.mxu0 %vm3140_vm0, %v3139_v0 }
 0x386   :  { %v2741_v34 = vpop.f32.mrf.mxu0 }
 0x388   :  { %v437_v35 = vpop.f32.mrf.mxu0 }
 0x38a   :  { %v2748_v37 = vpop.f32.mrf.mxu0 }
 0x38b   :  { %v524_v38 = vadd.f32 %v2748_v37, %v2741_v34 }
 0x38c   :  { %v518_v39 = vpop.f32.mrf.mxu0 }
 0x38d   :  { %v532_v41 = vadd.f32 %v2577_v36, %v524_v38  ;;  %v519_v42 = vadd.f32 %v518_v39, %v437_v35 }
 0x38f   :  { %v537_v43 = vmul.f32 1.442695, %v532_v41  ;;  %v531_v44 = vadd.f32 %v2577_v36, %v519_v42  ;;  %vm534_vm11 = vcmp.gt.f32.partialorder %v532_v41, 0.0 }
 0x391   :  { %2918 = vpow2.f32 %v537_v43  ;;  %v535_v45 = vmul.f32 1.442695, %v531_v44  ;;  %vm533_vm12 = vcmp.gt.f32.partialorder %v531_v44, 0.0 }
 0x393   :  { %2920 = vpow2.f32 %v535_v45 }
 0x39e   :  { %v2919_v46 = vpop.eup %2918 }
 0x39f   :  { %v2579_v47 = vadd.f32 -1.0, %v2919_v46 }
 0x3a0   :  { %v2921_v48 = vpop.eup %2920 }
 0x3a1   :  { %v542_v49 = vsel %vm534_vm11, %v532_v41, %v2579_v47  ;;  %v2578_v50 = vadd.f32 -1.0, %v2921_v48 }
 0x3a2   :  { %2761 = vmatpush3.xpose.msk.msra.mxu0 %vm543_vm10, %v542_v49 }
 0x3a3   :  { %v541_v51 = vsel %vm533_vm12, %v531_v44, %v2578_v50  ;;  %2762 = vmatprep.subr.mxu0 %v3139_v0 }
 0x3a4   :  { %2757 = vmatprep.mubr.msk.f32.mxu1 %vm543_vm10, %v541_v51 }
 0x3a5   :  { %2758 = vmatmul.mubr.msk.f32.vlgmr.msra.gmra.mxu1 %vm543_vm10, %v542_v49 }
 0x3a6   :  { %2763 = vmatpush3.xpose.msk.msra.mxu0 %vm543_vm10, %v541_v51 }
 0x3a9   :  { %2765 = vmatmul.mubr.msk.f32.vlgmr.msra.gmra.mxu0 %vm543_vm10, %v100_v52  ;;  %v985_v52 = vld [vmem:[#allocation9 + $0x58] sm:$0xf] }
 0x465   :  { %v2759_v55 = vpop.f32.mrf.mxu1 }
 0x466   :  { %756 = vperm.xlu0 %2894, %v2759_v55   ;;  %v801_v56 = vmul.f32 %v2759_v55, %v3279_v53  ;;  %v750_v57 = vmul.f32 %v2759_v55, %v3282_v54 }
 0x467   :  { %v616_v58 = vpop.f32.mrf.mxu1 }
 0x468   :  { %2767 = vmatprep.subr.mxu1 %v801_v56  ;;  %2774 = vmatprep.subr.mxu0 %v750_v57  ;;  %v800_v59 = vmul.f32 %v3279_v53, %v616_v58  ;;  %v749_v60 = vmul.f32 %v3282_v54, %v616_v58 }
 0x469   :  { %752 = vperm.xlu1 %2893, %v616_v58   ;;  %2768 = vmatpush3.msra.mxu1 %v801_v56  ;;  %v694_v61 = vpop.f32.mrf.mxu0 }
 0x46a   :  { %2775 = vmatpush3.msra.mxu0 %v750_v57  ;;  %2769 = vmatprep.subr.mxu1 %v800_v59  ;;  %v762_v1 = vrot.slane %v694_v61, %v3241_v21  ;;  %v711_v11 = vrot.slane %v694_v61, %v3238_v20 }
 0x46b   :  { %2776 = vmatprep.subr.mxu0 %v749_v60  ;;  %2770 = vmatpush3.msra.mxu1 %v800_v59  ;;  %v2766_v62 = vpop.f32.mrf.mxu0 }
 0x46c   :  { %2777 = vmatpush3.msra.mxu0 %v749_v60  ;;  %2781 = vmatprep.subr.msk.mxu1 %vm999_vm6, %v985_v52 }
 0x46d   :  { %2895 = vset.pattern.permute.xlu1 %v3144_v63  ;;  %2788 = vmatprep.subr.mxu0 %v3139_v0 }
 0x46e   :  { %705 = vperm.xlu1 %2895, %v2759_v55  }
 0x472   :  { %700 = vperm.xlu1 %2895, %v616_v58  }
 0x476   :  { %2896 = vset.pattern.permute.xlu1 %v3143_v17 }
 0x4e1   :  { %v757_v2 = vpop.permute.xlu0 %756 }
 0x4e2   :  { %v764_v3 = vadd.f32 %v762_v1, %v757_v2 }
 0x4e4   :  { %vm766_vm2 = vcmp.gt.f32.partialorder %v764_v3, 0.0  ;;  %v768_v4 = vmul.f32 0.2, %v764_v3  ;;  %v753_v5 = vpop.permute.xlu1 %752 }
 0x4e5   :  { %v763_v6 = vadd.f32 %v762_v1, %v753_v5  ;;  %v980_v5 = vld [vmem:[#allocation4] sm:$0xff] }
 0x4e6   :  { %v770_v7 = vsel %vm766_vm2, %v764_v3, %v768_v4 }
 0x4e7   :  { %vm765_vm3 = vcmp.gt.f32.partialorder %v763_v6, 0.0  ;;  %v767_v8 = vmul.f32 0.2, %v763_v6  ;;  %v772_v10 = vadd.f32 %v770_v7, %v3248_v40  ;;  %v981_v7 = vld [vmem:[#allocation4 + $0x8] sm:$0xff] }
 0x4e9   :  { %v706_v12 = vpop.permute.xlu1 %705  ;;  %v776_v15 = vsel %vm102_vm1, %v772_v10, -inf  ;;  %v769_v16 = vsel %vm765_vm3, %v763_v6, %v767_v8  ;;  %v984_v6 = vld [vmem:[#allocation9 + $0x50] sm:$0xff] }
 0x4ea   :  { %v713_v18 = vadd.f32 %v711_v11, %v706_v12  ;;  %777 = vmax.xlane.f32.xlu0 %v776_v15  ;;  %v771_v22 = vadd.f32 %v769_v16, %v3245_v31  ;;  %v986_v15 = vld [vmem:[#allocation9 + $0x60] sm:$0x3] }
 0x4ec   :  { %v773_v23 = vsel %vm102_vm1, %v771_v22, -inf  ;;  %v717_v25 = vmul.f32 0.2, %v713_v18  ;;  %vm715_vm4 = vcmp.gt.f32.partialorder %v713_v18, 0.0 }
 0x4ed   :  { %774 = vmax.xlane.f32.xlu1 %v773_v23  ;;  %v701_v24 = vpop.permute.xlu1 %700 }
 0x4ee   :  { %v712_v26 = vadd.f32 %v711_v11, %v701_v24  ;;  %v719_v29 = vsel %vm715_vm4, %v713_v18, %v717_v25 }
 0x4ef   :  { %v721_v33 = vadd.f32 %v719_v29, %v3248_v40 }
 0x4f0   :  { %vm714_vm5 = vcmp.gt.f32.partialorder %v712_v26, 0.0  ;;  %v716_v27 = vmul.f32 0.2, %v712_v26 }
 0x4f1   :  { %v725_v13 = vsel %vm102_vm1, %v721_v33, -inf }
 0x4f2   :  { %v718_v28 = vsel %vm714_vm5, %v712_v26, %v716_v27  ;;  %vm1980_vm5 = vcmask 64512  }
 0x4f3   :  { %v720_v30 = vadd.f32 %v718_v28, %v3245_v31 }
 0x4f5   :  { %v722_v32 = vsel %vm102_vm1, %v720_v30, -inf }
 0x4f6   :  { %723 = vmax.xlane.f32.xlu1 %v722_v32 }
 0x4fa   :  { %726 = vmax.xlane.f32.xlu1 %v725_v13 }
 0x573   :  { %v778_v14 = vpop.xlane.xlu0 %777 }
 0x574   :  { %v780_v34 = vsub.f32 %v772_v10, %v778_v14 }
 0x576   :  { %v775_v35 = vpop.xlane.xlu1 %774  ;;  %v783_v37 = vmul.f32 1.442695, %v780_v34 }
 0x577   :  { %v779_v36 = vsub.f32 %v771_v22, %v775_v35 }
 0x579   :  { %v781_v38 = vmul.f32 1.442695, %v779_v36 }
 0x57b   :  { %2922 = vpow2.f32 %v781_v38  ;;  %v3337_v38 = vld [vmem:[#allocation7 + $0x8] sm:$0xff] }
 0x57c   :  { %2924 = vpow2.f32 %v783_v37 }
 0x57f   :  { %v724_v39 = vpop.xlane.xlu1 %723 }
 0x580   :  { %v728_v41 = vsub.f32 %v720_v30, %v724_v39 }
 0x582   :  { %v730_v42 = vmul.f32 1.442695, %v728_v41 }
 0x583   :  { %v727_v31 = vpop.xlane.xlu1 %726 }
 0x584   :  { %2926 = vpow2.f32 %v730_v42  ;;  %v729_v43 = vsub.f32 %v721_v33, %v727_v31  ;;  %v3339_v42 = vld [vmem:[#allocation7] sm:$0xff] }
 0x586   :  { %v732_v44 = vmul.f32 1.442695, %v729_v43 }
 0x588   :  { %v2923_v40 = vpop.eup %2922  ;;  %2928 = vpow2.f32 %v732_v44 }
 0x589   :  { %v785_v45 = vsel %vm102_vm1, %v2923_v40, 0.0  ;;  %v2925_v46 = vpop.eup %2924 }
 0x58a   :  { %786 = vadd.xlane.f32.xlu1 %v785_v45  ;;  %v788_v47 = vsel %vm102_vm1, %v2925_v46, 0.0 }
 0x58e   :  { %789 = vadd.xlane.f32.xlu1 %v788_v47 }
 0x591   :  { %v2927_v48 = vpop.eup %2926 }
 0x592   :  { %v734_v49 = vsel %vm102_vm1, %v2927_v48, 0.0 }
 0x593   :  { %735 = vadd.xlane.f32.xlu1 %v734_v49 }
 0x595   :  { %v2929_v50 = vpop.eup %2928 }
 0x596   :  { %v737_v51 = vsel %vm102_vm1, %v2929_v50, 0.0 }
 0x597   :  { %738 = vadd.xlane.f32.xlu0 %v737_v51 }
 0x613   :  { %v787_v55 = vpop.xlane.xlu1 %786 }
 0x614   :  { %v791_v56 = vmax.f32 %v787_v55, 1e-30 }
 0x616   :  { %2930 = vrcp.f32 %v791_v56 }
 0x617   :  { %v790_v57 = vpop.xlane.xlu1 %789 }
 0x618   :  { %v792_v58 = vmax.f32 %v790_v57, 1e-30 }
 0x61a   :  { %2932 = vrcp.f32 %v792_v58 }
 0x61c   :  { %v736_v59 = vpop.xlane.xlu1 %735 }
 0x61d   :  { %v740_v60 = vmax.f32 %v736_v59, 1e-30 }
 0x61f   :  { %2934 = vrcp.f32 %v740_v60 }
 0x620   :  { %v739_v61 = vpop.xlane.xlu0 %738 }
 0x621   :  { %v741_v62 = vmax.f32 %v739_v61, 1e-30 }
 0x623   :  { %v2931_v1 = vpop.eup %2930  ;;  %2936 = vrcp.f32 %v741_v62 }
 0x624   :  { %v795_v2 = vmul.f32 %v2931_v1, %v2923_v40 }
 0x626   :  { %2771 = vmatprep.mubr.msk.f32.mxu1 %vm102_vm1, %v795_v2 }
 0x627   :  { %v2933_v3 = vpop.eup %2932 }
 0x628   :  { %v796_v4 = vmul.f32 %v2933_v3, %v2925_v46 }
 0x62a   :  { %2772 = vmatmul.mubr.msk.f32.vlgmr.msra.gmra.mxu1 %vm102_vm1, %v796_v4 }
 0x62b   :  { %2782 = vmatpush3.msk.msra.mxu1 %vm999_vm6, %v985_v52  ;;  %2785 = vmatprep.mubr.msk.f32.mxu1 %vm992_vm7, %v980_v5 }
 0x62c   :  { %v2935_v8 = vpop.eup %2934  ;;  %2783 = vmatprep.subr.mxu1 %v984_v6 }
 0x62d   :  { %2784 = vmatpush3.msra.mxu1 %v984_v6  ;;  %v744_v10 = vmul.f32 %v2935_v8, %v2927_v48 }
 0x62e   :  { %2786 = vmatmul.mubr.msk.f32.vlgmr.msra.gmra.mxu1 %vm992_vm7, %v981_v7 }
 0x62f   :  { %2778 = vmatprep.mubr.msk.f32.mxu0 %vm102_vm1, %v744_v10 }
 0x630   :  { %v2937_v11 = vpop.eup %2936 }
 0x631   :  { %v745_v12 = vmul.f32 %v2937_v11, %v2929_v50 }
 0x633   :  { %2779 = vmatmul.mubr.msk.f32.vlgmr.msra.gmra.mxu0 %vm102_vm1, %v745_v12 }
 0x634   :  { %2789 = vmatpush3.xpose.msk.msra.mxu0 %vm992_vm7, %v981_v7  ;;  %2792 = vmatprep.mubr.msk.f32.mxu0 %vm3140_vm0, %v3139_v0 }
 0x635   :  { %2790 = vmatprep.subr.mxu0 %v3139_v0 }
 0x638   :  { %2791 = vmatpush3.xpose.msk.msra.mxu0 %vm992_vm7, %v980_v5 }
 0x63b   :  { %2793 = vmatmul.mubr.msk.f32.vlgmr.msra.gmra.mxu0 %vm992_vm7, %v986_v15 }
 0x6ea   :  { %v2773_v16 = vpop.f32.mrf.mxu1 }
 0x6ec   :  { %v874_v18 = vpop.f32.mrf.mxu1 }
 0x6ee   :  { %v2787_v22 = vpop.f32.mrf.mxu1 }
 0x6ef   :  { %1206 = vperm.xlu0 %2894, %v2787_v22   ;;  %v1248_v23 = vmul.f32 %v2787_v22, %v3279_v53  ;;  %v3326_v27 = vmul.f32 %v2787_v22, %v3282_v54 }
 0x6f0   :  { %v3320_v24 = vpop.f32.mrf.mxu1 }
 0x6f1   :  { %2795 = vmatprep.subr.mxu1 %v1248_v23  ;;  %1202 = vperm.xlu1 %2896, %v3320_v24   ;;  %v1247_v25 = vmul.f32 %v3320_v24, %v3279_v53 }
 0x6f2   :  { %2796 = vmatpush3.msra.mxu1 %v1248_v23 }
 0x6f3   :  { %v2780_v26 = vpop.f32.mrf.mxu0  ;;  %2797 = vmatprep.subr.mxu1 %v1247_v25 }
 0x6f4   :  { %v3328_v28 = vadd.f32 %v2780_v26, %v2773_v16  ;;  %2798 = vmatpush3.msra.mxu1 %v1247_v25 }
 0x6f5   :  { %2897 = vset.pattern.permute.xlu1 %v3144_v63  ;;  %v955_v29 = vpop.f32.mrf.mxu0  ;;  %2802 = vmatprep.subr.mxu1 %v3326_v27 }
 0x6f6   :  { %v3332_v30 = vadd.f32 %v955_v29, %v874_v18  ;;  %1153 = vperm.xlu1 %2897, %v3320_v24  }
 0x6fa   :  { %1158 = vperm.xlu1 %2897, %v2787_v22  }
 0x6fb   :  { %v1147_v32 = vpop.f32.mrf.mxu0 }
 0x6fc   :  { %v1212_v13 = vrot.slane %v1147_v32, %v3241_v21  ;;  %v1164_v31 = vrot.slane %v1147_v32, %v3238_v20 }
 0x6fd   :  { %v2794_v33 = vpop.f32.mrf.mxu0 }
 0x6fe   :  { %2898 = vset.pattern.permute.xlu1 %v3143_v17 }
 0x76a   :  { %v1207_v14 = vpop.permute.xlu0 %1206 }
 0x76b   :  { %v1214_v34 = vadd.f32 %v1212_v13, %v1207_v14 }
 0x76c   :  { %v1203_v35 = vpop.permute.xlu1 %1202 }
 0x76d   :  { %vm1216_vm8 = vcmp.gt.f32.partialorder %v1214_v34, 0.0  ;;  %v1218_v36 = vmul.f32 0.2, %v1214_v34  ;;  %v1213_v37 = vadd.f32 %v1212_v13, %v1203_v35 }
 0x76f   :  { %vm1215_vm9 = vcmp.gt.f32.partialorder %v1213_v37, 0.0  ;;  %v1217_v39 = vmul.f32 0.2, %v1213_v37  ;;  %v1220_v41 = vsel %vm1216_vm8, %v1214_v34, %v1218_v36 }
 0x770   :  { %v1222_v43 = vadd.f32 %v1220_v41, %v3337_v38 }
 0x771   :  { %v1154_v17 = vpop.permute.xlu1 %1153  ;;  %v1219_v44 = vsel %vm1215_vm9, %v1213_v37, %v1217_v39 }
 0x772   :  { %v1165_v40 = vadd.f32 %v1164_v31, %v1154_v17  ;;  %v1226_v45 = vsel %vm102_vm1, %v1222_v43, -inf  ;;  %v1221_v46 = vadd.f32 %v1219_v44, %v3339_v42 }
 0x773   :  { %1227 = vmax.xlane.f32.xlu1 %v1226_v45  ;;  %v989_v45 = vld [vmem:[#allocation9 + $0x78] sm:$0xff] }
 0x774   :  { %vm1167_vm10 = vcmp.gt.f32.partialorder %v1165_v40, 0.0  ;;  %v1169_v47 = vmul.f32 0.2, %v1165_v40  ;;  %v1223_v48 = vsel %vm102_vm1, %v1221_v46, -inf  ;;  %2809 = vmatprep.subr.mxu0 %v989_v45 }
 0x775   :  { %v1159_v49 = vpop.permute.xlu1 %1158  ;;  %1224 = vmax.xlane.f32.xlu0 %v1223_v48  ;;  %2810 = vmatpush3.msra.mxu0 %v989_v45 }
 0x776   :  { %v1166_v50 = vadd.f32 %v1164_v31, %v1159_v49  ;;  %v1171_v51 = vsel %vm1167_vm10, %v1165_v40, %v1169_v47  ;;  %v1199_v31 = vmul.f32 %v3320_v24, %v3282_v54  ;;  %v2589_v24 = vld [vmem:[#allocation9 + $0x48] ss:$0 sm:$0xff] }
 0x777   :  { %v1173_v52 = vadd.f32 %v1171_v51, %v3339_v42  ;;  %v968_v47 = vadd.f32 %v2589_v24, %v3332_v30  ;;  %v969_v48 = vadd.f32 %v2589_v24, %v3328_v28  ;;  %v2602_v51 = vld [vmem:[#allocation9 + $0x68] ss:$0 sm:$0xff] }
 0x778   :  { %vm1168_vm11 = vcmp.gt.f32.partialorder %v1166_v50, 0.0  ;;  %v1170_v55 = vmul.f32 0.2, %v1166_v50 }
 0x779   :  { %v1175_v56 = vsel %vm102_vm1, %v1173_v52, -inf  ;;  %vm971_vm14 = vcmp.gt.f32.partialorder %v969_v48, 0.0 }
 0x77a   :  { %1176 = vmax.xlane.f32.xlu0 %v1175_v56  ;;  %v1172_v57 = vsel %vm1168_vm11, %v1166_v50, %v1170_v55  ;;  %v972_v50 = vmul.f32 1.442695, %v968_v47  ;;  %v974_v56 = vmul.f32 1.442695, %v969_v48 }
 0x77b   :  { %v1174_v58 = vadd.f32 %v1172_v57, %v3337_v38 }
 0x77d   :  { %v1178_v59 = vsel %vm102_vm1, %v1174_v58, -inf }
 0x77e   :  { %1179 = vmax.xlane.f32.xlu0 %v1178_v59 }
 0x7fc   :  { %v1228_v60 = vpop.xlane.xlu1 %1227 }
 0x7fd   :  { %v1230_v61 = vsub.f32 %v1222_v43, %v1228_v60 }
 0x7fe   :  { %v1225_v62 = vpop.xlane.xlu0 %1224 }
 0x7ff   :  { %v1233_v1 = vmul.f32 1.442695, %v1230_v61  ;;  %v1229_v2 = vsub.f32 %v1221_v46, %v1225_v62  ;;  %v988_v46 = vld [vmem:[#allocation9 + $0x70] sm:$0xff] }
 0x800   :  { %2811 = vmatprep.subr.mxu0 %v988_v46 }
 0x801   :  { %2938 = vpow2.f32 %v1233_v1  ;;  %v1231_v3 = vmul.f32 1.442695, %v1229_v2  ;;  %2812 = vmatpush3.msra.mxu0 %v988_v46 }
 0x803   :  { %2940 = vpow2.f32 %v1231_v3  ;;  %v1177_v4 = vpop.xlane.xlu0 %1176  ;;  %v1857_v3 = vld [vmem:[#allocation9 + $0x90] sm:$0x3] }
 0x804   :  { %v1181_v5 = vsub.f32 %v1173_v52, %v1177_v4 }
 0x806   :  { %v1183_v6 = vmul.f32 1.442695, %v1181_v5 }
 0x807   :  { %v1180_v7 = vpop.xlane.xlu0 %1179 }
 0x808   :  { %2942 = vpow2.f32 %v1183_v6  ;;  %v1182_v8 = vsub.f32 %v1174_v58, %v1180_v7 }
 0x80a   :  { %v1185_v10 = vmul.f32 1.442695, %v1182_v8 }
 0x80c   :  { %2944 = vpow2.f32 %v1185_v10 }
 0x80e   :  { %v2939_v11 = vpop.eup %2938 }
 0x80f   :  { %v1238_v12 = vsel %vm102_vm1, %v2939_v11, 0.0 }
 0x810   :  { %v2941_v15 = vpop.eup %2940  ;;  %1239 = vadd.xlane.f32.xlu0 %v1238_v12 }
 0x811   :  { %v1235_v16 = vsel %vm102_vm1, %v2941_v15, 0.0 }
 0x812   :  { %1236 = vadd.xlane.f32.xlu1 %v1235_v16 }
 0x815   :  { %v2943_v18 = vpop.eup %2942 }
 0x816   :  { %v1187_v22 = vsel %vm102_vm1, %v2943_v18, 0.0 }
 0x817   :  { %1188 = vadd.xlane.f32.xlu1 %v1187_v22  ;;  %v990_v22 = vld [vmem:[#allocation9 + $0x80] sm:$0x3] }
 0x819   :  { %v2945_v23 = vpop.eup %2944 }
 0x81a   :  { %v1190_v25 = vsel %vm102_vm1, %v2945_v23, 0.0 }
 0x81b   :  { %1191 = vadd.xlane.f32.xlu0 %v1190_v25 }
 0x899   :  { %v1240_v26 = vpop.xlane.xlu0 %1239 }
 0x89a   :  { %v1242_v29 = vmax.f32 %v1240_v26, 1e-30 }
 0x89b   :  { %v1237_v32 = vpop.xlane.xlu1 %1236 }
 0x89c   :  { %v1241_v33 = vmax.f32 %v1237_v32, 1e-30  ;;  %2946 = vrcp.f32 %v1242_v29  ;;  %v1885_v29 = vld [vmem:[#allocation9 + $0xa0] sm:$0xff] }
 0x89e   :  { %2948 = vrcp.f32 %v1241_v33 }
 0x8a0   :  { %v1189_v13 = vpop.xlane.xlu1 %1188 }
 0x8a1   :  { %v1193_v14 = vmax.f32 %v1189_v13, 1e-30 }
 0x8a3   :  { %2950 = vrcp.f32 %v1193_v14 }
 0x8a4   :  { %v1192_v34 = vpop.xlane.xlu0 %1191 }
 0x8a5   :  { %v1194_v35 = vmax.f32 %v1192_v34, 1e-30 }
 0x8a7   :  { %2952 = vrcp.f32 %v1194_v35 }
 0x8a8   :  { %2954 = vpow2.f32 %v972_v50 }
 0x8a9   :  { %v2947_v36 = vpop.eup %2946  ;;  %2956 = vpow2.f32 %v974_v56 }
 0x8aa   :  { %v1246_v41 = vmul.f32 %v2947_v36, %v2939_v11  ;;  %v1862_v11 = vrot.slane %v1857_v3, %v3238_v20 }
 0x8ab   :  { %v2949_v37 = vpop.eup %2948 }
 0x8ac   :  { %v1245_v39 = vmul.f32 %v2949_v37, %v2941_v15 }
 0x8ae   :  { %2799 = vmatprep.mubr.msk.f32.mxu1 %vm102_vm1, %v1245_v39 }
 0x8af   :  { %2800 = vmatmul.mubr.msk.f32.vlgmr.msra.gmra.mxu1 %vm102_vm1, %v1246_v41 }
 0x8b0   :  { %v2951_v43 = vpop.eup %2950  ;;  %2803 = vmatpush3.msra.mxu1 %v3326_v27 }
 0x8b1   :  { %2804 = vmatprep.subr.mxu1 %v1199_v31  ;;  %v1197_v17 = vmul.f32 %v2951_v43, %v2943_v18  ;;  %v1886_v18 = vld [vmem:[#allocation9 + $0xa8] sm:$0xff] }
 0x8b2   :  { %2805 = vmatpush3.msra.mxu1 %v1199_v31 }
 0x8b3   :  { %2806 = vmatprep.mubr.msk.f32.mxu1 %vm102_vm1, %v1197_v17  ;;  %2816 = vmatprep.subr.mxu1 %v3139_v0 }
 0x8b4   :  { %v2953_v44 = vpop.eup %2952 }
 0x8b5   :  { %v1198_v40 = vmul.f32 %v2953_v44, %v2945_v23  ;;  %v2955_v1 = vpop.eup %2954  ;;  %v1868_v23 = vrot.slane %v1857_v3, %v3241_v21 }
 0x8b6   :  { %v2957_v30 = vpop.eup %2956  ;;  %v2590_v2 = vadd.f32 -1.0, %v2955_v1 }
 0x8b7   :  { %2807 = vmatmul.mubr.msk.f32.vlgmr.msra.gmra.mxu1 %vm102_vm1, %v1198_v40  ;;  %v2591_v6 = vadd.f32 -1.0, %v2957_v30 }
 0x8b8   :  { %2820 = vmatprep.mubr.msk.f32.mxu1 %vm3140_vm0, %v3139_v0  ;;  %vm970_vm0 = vcmp.gt.f32.partialorder %v968_v47, 0.0 }
 0x8b9   :  { %v978_v7 = vsel %vm970_vm0, %v968_v47, %v2590_v2  ;;  %v979_v15 = vsel %vm971_vm14, %v969_v48, %v2591_v6 }
 0x8ba   :  { %v1863_v16 = vmul.f32 %v1862_v11, %v978_v7  ;;  %v1864_v25 = vmul.f32 %v1862_v11, %v979_v15 }
 0x8bc   :  { %v3373_v26 = vadd.f32 %v1868_v23, %v1863_v16 }
 0x96f   :  { %v2801_v27 = vpop.f32.mrf.mxu1 }
 0x971   :  { %v1321_v49 = vpop.f32.mrf.mxu1 }
 0x977   :  { %v2808_v52 = vpop.f32.mrf.mxu1 }
 0x978   :  { %v1408_v55 = vadd.f32 %v2808_v52, %v2801_v27 }
 0x979   :  { %v1402_v57 = vpop.f32.mrf.mxu1 }
 0x97a   :  { %v1416_v58 = vadd.f32 %v2602_v51, %v1408_v55  ;;  %v1403_v59 = vadd.f32 %v1402_v57, %v1321_v49 }
 0x97c   :  { %v1421_v60 = vmul.f32 1.442695, %v1416_v58  ;;  %v1415_v61 = vadd.f32 %v2602_v51, %v1403_v59  ;;  %vm1418_vm12 = vcmp.gt.f32.partialorder %v1416_v58, 0.0 }
 0x97e   :  { %2958 = vpow2.f32 %v1421_v60  ;;  %v1419_v62 = vmul.f32 1.442695, %v1415_v61  ;;  %vm1417_vm13 = vcmp.gt.f32.partialorder %v1415_v61, 0.0 }
 0x980   :  { %2960 = vpow2.f32 %v1419_v62 }
 0x98b   :  { %v2959_v28 = vpop.eup %2958 }
 0x98c   :  { %v2604_v4 = vadd.f32 -1.0, %v2959_v28 }
 0x98d   :  { %v2961_v5 = vpop.eup %2960 }
 0x98e   :  { %v1426_v8 = vsel %vm1418_vm12, %v1416_v58, %v2604_v4  ;;  %v2603_v10 = vadd.f32 -1.0, %v2961_v5 }
 0x98f   :  { %2817 = vmatpush3.xpose.msk.msra.mxu1 %vm102_vm1, %v1426_v8 }
 0x990   :  { %v1425_v12 = vsel %vm1417_vm13, %v1415_v61, %v2603_v10  ;;  %2818 = vmatprep.subr.mxu1 %v3139_v0  ;;  %v3378_v0 = vadd.f32 %v1868_v23, %v1864_v25 }
 0x991   :  { %2813 = vmatprep.mubr.msk.f32.mxu0 %vm102_vm1, %v1425_v12 }
 0x992   :  { %2814 = vmatmul.mubr.msk.f32.vlgmr.msra.gmra.mxu0 %vm102_vm1, %v1426_v8  ;;  %v3404_v8 = vld [vmem:[#allocation9 + $0xb0] sm:$0x7] }
 0x993   :  { %2819 = vmatpush3.xpose.msk.msra.mxu1 %vm102_vm1, %v1425_v12  ;;  %v1890_v11 = vrot.slane %v3404_v8, %v3238_v20 }
 0x994   :  { %2837 = vmatprep.subr.mxu1 %v1886_v18 }
 0x996   :  { %2821 = vmatmul.mubr.msk.f32.vlgmr.msra.gmra.mxu1 %vm102_vm1, %v990_v22 }
 0x997   :  { %2838 = vmatpush3.msra.mxu1 %v1886_v18  ;;  %2841 = vmatprep.mubr.msk.f32.mxu1 %vm102_vm1, %v3373_v26 }
 0x998   :  { %2839 = vmatprep.subr.mxu1 %v1885_v29 }
 0x999   :  { %2840 = vmatpush3.msra.mxu1 %v1885_v29  ;;  %v1977_v29 = vrot.slane %v3404_v8, %v3241_v21 }
 0x99a   :  { %2842 = vmatmul.mubr.msk.f32.vlgmr.msra.gmra.mxu1 %vm102_vm1, %v3378_v0 }
 0xa52   :  { %v2815_v32 = vpop.f32.mrf.mxu0 }
 0xa53   :  { %1636 = vperm.xlu0 %2894, %v2815_v32   ;;  %v1678_v33 = vmul.f32 %v2815_v32, %v3279_v53  ;;  %v3389_v35 = vmul.f32 %v2815_v32, %v3282_v54 }
 0xa54   :  { %v3383_v13 = vpop.f32.mrf.mxu0 }
 0xa55   :  { %2823 = vmatprep.subr.mxu0 %v1678_v33  ;;  %1632 = vperm.xlu1 %2898, %v3383_v13   ;;  %v1677_v14 = vmul.f32 %v3383_v13, %v3279_v53 }
 0xa56   :  { %v1577_v34 = vpop.f32.mrf.mxu1  ;;  %2824 = vmatpush3.msra.mxu0 %v1678_v33 }
 0xa57   :  { %2825 = vmatprep.subr.mxu0 %v1677_v14  ;;  %v1642_v37 = vrot.slane %v1577_v34, %v3241_v21  ;;  %v1594_v40 = vrot.slane %v1577_v34, %v3238_v20 }
 0xa58   :  { %v2822_v36 = vpop.f32.mrf.mxu1  ;;  %2826 = vmatpush3.msra.mxu0 %v1677_v14 }
 0xa59   :  { %2899 = vset.pattern.permute.xlu1 %v3144_v63  ;;  %2830 = vmatprep.subr.mxu0 %v3389_v35 }
 0xa5a   :  { %1583 = vperm.xlu1 %2899, %v3383_v13   ;;  %v2843_v5 = vpop.f32.mrf.mxu1 }
 0xa5b   :  { %v1969_v23 = vadd.f32 %v2843_v5, %v1890_v11 }
 0xa5c   :  { %v1963_v10 = vpop.f32.mrf.mxu1 }
 0xa5d   :  { %v1964_v15 = vadd.f32 %v1963_v10, %v1890_v11  ;;  %v1973_v33 = vmax.f32 %v1969_v23, 0.0 }
 0xa5e   :  { %1588 = vperm.xlu1 %2899, %v2815_v32  }
 0xa5f   :  { %v1972_v25 = vmax.f32 %v1964_v15, 0.0 }
 0xa61   :  { %v1978_v34 = vmul.f32 %v1977_v29, %v1972_v25 }
 0xace   :  { %v1637_v39 = vpop.permute.xlu0 %1636 }
 0xacf   :  { %v1644_v41 = vadd.f32 %v1642_v37, %v1637_v39  ;;  %v1981_v39 = vsel %vm1980_vm5, %v1978_v34, 0.0 }
 0xad0   :  { %v1633_v53 = vpop.permute.xlu1 %1632 }
 0xad1   :  { %vm1646_vm15 = vcmp.gt.f32.partialorder %v1644_v41, 0.0  ;;  %v1648_v31 = vmul.f32 0.2, %v1644_v41  ;;  %v1643_v43 = vadd.f32 %v1642_v37, %v1633_v53 }
 0xad3   :  { %vm1645_vm2 = vcmp.gt.f32.partialorder %v1643_v43, 0.0  ;;  %v1647_v17 = vmul.f32 0.2, %v1643_v43  ;;  %v1650_v44 = vsel %vm1646_vm15, %v1644_v41, %v1648_v31  ;;  %v1979_v41 = vmul.f32 %v1977_v29, %v1973_v33 }
 0xad4   :  { %v1652_v63 = vadd.f32 %v1650_v44, %v3337_v38 }
 0xad5   :  { %v1584_v45 = vpop.permute.xlu1 %1583  ;;  %v1649_v46 = vsel %vm1645_vm2, %v1643_v43, %v1647_v17  ;;  %v1984_v53 = vsel %vm1980_vm5, %v1979_v41, 0.0 }
 0xad6   :  { %v1595_v24 = vadd.f32 %v1594_v40, %v1584_v45  ;;  %v1656_v27 = vsel %vm102_vm1, %v1652_v63, -inf  ;;  %v1651_v47 = vadd.f32 %v1649_v46, %v3339_v42 }
 0xad7   :  { %1657 = vmax.xlane.f32.xlu1 %v1656_v27 }
 0xad8   :  { %vm1597_vm3 = vcmp.gt.f32.partialorder %v1595_v24, 0.0  ;;  %v1599_v48 = vmul.f32 0.2, %v1595_v24  ;;  %v1653_v49 = vsel %vm102_vm1, %v1651_v47, -inf }
 0xad9   :  { %1654 = vmax.xlane.f32.xlu0 %v1653_v49  ;;  %v1589_v50 = vpop.permute.xlu1 %1588  ;;  %v1629_v49 = vmul.f32 %v3383_v13, %v3282_v54  ;;  %v2614_v13 = vld [vmem:[#allocation9 + $0x88] ss:$0 sm:$0xff] }
 0xada   :  { %v1596_v51 = vadd.f32 %v1594_v40, %v1589_v50  ;;  %v1601_v52 = vsel %vm1597_vm3, %v1595_v24, %v1599_v48 }
 0xadb   :  { %v1603_v55 = vadd.f32 %v1601_v52, %v3339_v42 }
 0xadc   :  { %vm1598_vm4 = vcmp.gt.f32.partialorder %v1596_v51, 0.0  ;;  %v1600_v56 = vmul.f32 0.2, %v1596_v51 }
 0xadd   :  { %v1605_v57 = vsel %vm102_vm1, %v1603_v55, -inf }
 0xade   :  { %1606 = vmax.xlane.f32.xlu0 %v1605_v57  ;;  %v1602_v58 = vsel %vm1598_vm4, %v1596_v51, %v1600_v56  ;;  %v2004_v56 = vld [vmem:[#allocation9 + $0xc0] sm:$0xff]  ;;  %v2003_v57 = vld [vmem:[#allocation9 + $0xb8] sm:$0xff] }
 0xadf   :  { %v1604_v59 = vadd.f32 %v1602_v58, %v3337_v38 }
 0xae1   :  { %v1608_v60 = vsel %vm102_vm1, %v1604_v59, -inf }
 0xae2   :  { %1609 = vmax.xlane.f32.xlu0 %v1608_v60 }
 0xb60   :  { %v1658_v61 = vpop.xlane.xlu1 %1657 }
 0xb61   :  { %v1660_v62 = vsub.f32 %v1652_v63, %v1658_v61 }
 0xb62   :  { %v1655_v1 = vpop.xlane.xlu0 %1654 }
 0xb63   :  { %v1663_v30 = vmul.f32 1.442695, %v1660_v62  ;;  %v1659_v2 = vsub.f32 %v1651_v47, %v1655_v1 }
 0xb65   :  { %2962 = vpow2.f32 %v1663_v30  ;;  %v1661_v28 = vmul.f32 1.442695, %v1659_v2 }
 0xb67   :  { %2964 = vpow2.f32 %v1661_v28  ;;  %v1607_v42 = vpop.xlane.xlu0 %1606  ;;  %v1858_v28 = vld [vmem:[#allocation9 + $0x98] sm:$0x3] }
 0xb68   :  { %v1611_v3 = vsub.f32 %v1603_v55, %v1607_v42  ;;  %v1880_v11 = vrot.slane %v1858_v28, %v3241_v21 }
 0xb6a   :  { %v1613_v4 = vmul.f32 1.442695, %v1611_v3 }
 0xb6b   :  { %v1610_v6 = vpop.xlane.xlu0 %1609 }
 0xb6c   :  { %2966 = vpow2.f32 %v1613_v4  ;;  %v1612_v7 = vsub.f32 %v1604_v59, %v1610_v6  ;;  %v1874_v4 = vrot.slane %v1858_v28, %v3238_v20 }
 0xb6e   :  { %v1615_v38 = vmul.f32 1.442695, %v1612_v7 }
 0xb70   :  { %2968 = vpow2.f32 %v1615_v38 }
 0xb72   :  { %v2963_v12 = vpop.eup %2962 }
 0xb73   :  { %v1668_v16 = vsel %vm102_vm1, %v2963_v12, 0.0 }
 0xb74   :  { %v2965_v18 = vpop.eup %2964  ;;  %1669 = vadd.xlane.f32.xlu0 %v1668_v16 }
 0xb75   :  { %v1665_v22 = vsel %vm102_vm1, %v2965_v18, 0.0 }
 0xb76   :  { %1666 = vadd.xlane.f32.xlu1 %v1665_v22 }
 0xb79   :  { %v2967_v32 = vpop.eup %2966 }
 0xb7a   :  { %v1617_v14 = vsel %vm102_vm1, %v2967_v32, 0.0 }
 0xb7b   :  { %1618 = vadd.xlane.f32.xlu1 %v1617_v14 }
 0xb7d   :  { %v2969_v36 = vpop.eup %2968 }
 0xb7e   :  { %v1620_v37 = vsel %vm102_vm1, %v2969_v36, 0.0 }
 0xb7f   :  { %1621 = vadd.xlane.f32.xlu0 %v1620_v37  ;;  %1982 = vadd.xlane.f32.xlu1 %v1981_v39 }
 0xb83   :  { %1985 = vadd.xlane.f32.xlu1 %v1984_v53  ;;  %v3145_v53 = vmov 0  }
 0xb84   :  { %2901 = vset.pattern.permute.xlu0 %v3145_v53  ;;  %2900 = vset.pattern.permute.xlu1 %v3145_v53 }
 0xbfd   :  { %v1670_v31 = vpop.xlane.xlu0 %1669 }
 0xbfe   :  { %v1672_v43 = vmax.f32 %v1670_v31, 1e-30 }
 0xbff   :  { %v1667_v17 = vpop.xlane.xlu1 %1666 }
 0xc00   :  { %v1671_v44 = vmax.f32 %v1667_v17, 1e-30  ;;  %2970 = vrcp.f32 %v1672_v43 }
 0xc02   :  { %2972 = vrcp.f32 %v1671_v44 }
 0xc04   :  { %v1619_v40 = vpop.xlane.xlu1 %1618 }
 0xc05   :  { %v1623_v63 = vmax.f32 %v1619_v40, 1e-30 }
 0xc07   :  { %2974 = vrcp.f32 %v1623_v63 }
 0xc08   :  { %v1622_v45 = vpop.xlane.xlu0 %1621  ;;  %v1983_v31 = vpop.xlane.xlu1 %1982 }
 0xc09   :  { %v1624_v46 = vmax.f32 %v1622_v45, 1e-30 }
 0xc0b   :  { %2976 = vrcp.f32 %v1624_v46 }
 0xc0c   :  { %v1986_v44 = vpop.xlane.xlu1 %1985 }
 0xc0d   :  { %v2971_v24 = vpop.eup %2970 }
 0xc0e   :  { %v1676_v48 = vmul.f32 %v2971_v24, %v2963_v12 }
 0xc0f   :  { %v2973_v27 = vpop.eup %2972 }
 0xc10   :  { %v1675_v47 = vmul.f32 %v2973_v27, %v2965_v18  ;;  %v1884_v18 = vld [vmem:[#allocation9 + $0xc8] sm:$0x7] }
 0xc11   :  { %v2008_v22 = vrot.slane %v1884_v18, %v3238_v20  ;;  %v2095_v34 = vrot.slane %v1884_v18, %v3241_v21  ;;  %v1989_v20 = vsub.s32 2, %v3235_v19 }
 0xc12   :  { %2827 = vmatprep.mubr.msk.f32.mxu0 %vm102_vm1, %v1675_v47 }
 0xc13   :  { %2828 = vmatmul.mubr.msk.f32.vlgmr.msra.gmra.mxu0 %vm102_vm1, %v1676_v48  ;;  %v1990_v43 = vrot.slane %v3404_v8, %v1989_v20  ;;  %v2107_v63 = vrot.slane %v1884_v18, %v1989_v20 }
 0xc14   :  { %v2975_v50 = vpop.eup %2974  ;;  %2831 = vmatpush3.msra.mxu0 %v3389_v35 }
 0xc15   :  { %2832 = vmatprep.subr.mxu0 %v1629_v49  ;;  %v1627_v51 = vmul.f32 %v2975_v50, %v2967_v32  ;;  %v1991_v17 = vadd.f32 %v1990_v43, %v1983_v31  ;;  %v1992_v21 = vadd.f32 %v1990_v43, %v1986_v44 }
 0xc16   :  { %2833 = vmatpush3.msra.mxu0 %v1629_v49 }
 0xc17   :  { %2834 = vmatprep.mubr.msk.f32.mxu0 %vm102_vm1, %v1627_v51  ;;  %2844 = vmatprep.subr.mxu0 %v2004_v56  ;;  %v1993_v40 = vsub.f32 0.0, %v1991_v17  ;;  %v1994_v46 = vsub.f32 0.0, %v1992_v21  ;;  %v2350_v21 = vld [vmem:[#allocation9 + $0x100] sm:$0xff] }
 0xc18   :  { %v2977_v52 = vpop.eup %2976 }
 0xc19   :  { %v1628_v55 = vmul.f32 %v2977_v52, %v2969_v36  ;;  %v1995_v45 = vmul.f32 1.442695, %v1993_v40  ;;  %v1997_v47 = vmul.f32 1.442695, %v1994_v46 }
 0xc1b   :  { %2835 = vmatmul.mubr.msk.f32.vlgmr.msra.gmra.mxu0 %vm102_vm1, %v1628_v55 }
 0xc1c   :  { %2845 = vmatpush3.msra.mxu0 %v2004_v56 }
 0xc1d   :  { %2846 = vmatprep.subr.mxu0 %v2003_v57 }
 0xc1e   :  { %2847 = vmatpush3.msra.mxu0 %v2003_v57 }
 0xcd3   :  { %v2829_v58 = vpop.f32.mrf.mxu0 }
 0xcd5   :  { %v1751_v54 = vpop.f32.mrf.mxu0 }
 0xcdb   :  { %v2836_v59 = vpop.f32.mrf.mxu0 }
 0xcdc   :  { %v1838_v35 = vadd.f32 %v2836_v59, %v2829_v58 }
 0xcdd   :  { %v1832_v60 = vpop.f32.mrf.mxu0 }
 0xcde   :  { %v1846_v61 = vadd.f32 %v2614_v13, %v1838_v35  ;;  %v1833_v62 = vadd.f32 %v1832_v60, %v1751_v54 }
 0xce0   :  { %v1851_v1 = vmul.f32 1.442695, %v1846_v61  ;;  %v1845_v30 = vadd.f32 %v2614_v13, %v1833_v62  ;;  %vm1848_vm6 = vcmp.gt.f32.partialorder %v1846_v61, 0.0 }
 0xce2   :  { %2978 = vpow2.f32 %v1851_v1  ;;  %v1849_v2 = vmul.f32 1.442695, %v1845_v30  ;;  %vm1847_vm7 = vcmp.gt.f32.partialorder %v1845_v30, 0.0 }
 0xce4   :  { %2980 = vpow2.f32 %v1849_v2 }
 0xce5   :  { %2982 = vpow2.f32 %v1995_v45  ;;  %v2625_v45 = vld [vmem:[#allocation9 + $0xf0] ss:$0 sm:$0xff] }
 0xce6   :  { %2984 = vpow2.f32 %v1997_v47 }
 0xcef   :  { %v2979_v42 = vpop.eup %2978 }
 0xcf0   :  { %v2616_v3 = vadd.f32 -1.0, %v2979_v42 }
 0xcf1   :  { %v2981_v5 = vpop.eup %2980 }
 0xcf2   :  { %v1856_v6 = vsel %vm1848_vm6, %v1846_v61, %v2616_v3  ;;  %v2615_v7 = vadd.f32 -1.0, %v2981_v5  ;;  %v2983_v8 = vpop.eup %2982 }
 0xcf3   :  { %v1876_v38 = vmul.f32 %v1874_v4, %v1856_v6  ;;  %v1999_v55 = vadd.f32 1.0, %v2983_v8  ;;  %v2985_v56 = vpop.eup %2984 }
 0xcf4   :  { %v1855_v10 = vsel %vm1847_vm7, %v1845_v30, %v2615_v7  ;;  %v2000_v54 = vadd.f32 1.0, %v2985_v56  ;;  %v2447_v56 = vld [vmem:[#allocation9 + $0x110] sm:$0xff] }
 0xcf5   :  { %v1875_v12 = vmul.f32 %v1874_v4, %v1855_v10  ;;  %v3427_v16 = vadd.f32 %v1880_v11, %v1876_v38 }
 0xcf7   :  { %v3425_v15 = vadd.f32 %v1880_v11, %v1875_v12 }
 0xcf9   :  { %2848 = vmatprep.mubr.msk.f32.mxu0 %vm102_vm1, %v3425_v15 }
 0xcfa   :  { %2849 = vmatmul.mubr.msk.f32.vlgmr.msra.gmra.mxu0 %vm102_vm1, %v3427_v16 }
 0xdba   :  { %v2850_v23 = vpop.f32.mrf.mxu0 }
 0xdbb   :  { %v2087_v25 = vadd.f32 %v2850_v23, %v2008_v22 }
 0xdbc   :  { %v2081_v29 = vpop.f32.mrf.mxu0 }
 0xdbd   :  { %v2082_v32 = vadd.f32 %v2081_v29, %v2008_v22  ;;  %v2091_v33 = vmax.f32 %v2087_v25, 0.0  ;;  %v2167_v25 = vld [vmem:[#allocation9 + $0xd8] sm:$0xff] }
 0xdbe   :  { %2858 = vmatprep.subr.mxu0 %v2167_v25 }
 0xdbf   :  { %v2090_v14 = vmax.f32 %v2082_v32, 0.0  ;;  %v2097_v39 = vmul.f32 %v2095_v34, %v2091_v33  ;;  %2859 = vmatpush3.msra.mxu0 %v2167_v25  ;;  %v2166_v33 = vld [vmem:[#allocation9 + $0xd0] sm:$0xff] }
 0xdc0   :  { %2860 = vmatprep.subr.mxu0 %v2166_v33 }
 0xdc1   :  { %v2096_v36 = vmul.f32 %v2095_v34, %v2090_v14  ;;  %v2101_v41 = vsel %vm1980_vm5, %v2097_v39, 0.0  ;;  %v2169_v14 = vld [vmem:[#allocation9 + $0xe8] sm:$0xff]  ;;  %2861 = vmatpush3.msra.mxu0 %v2166_v33 }
 0xdc2   :  { %2851 = vmatprep.subr.mxu1 %v2169_v14  ;;  %2872 = vmatprep.subr.mxu0 %v2447_v56 }
 0xdc3   :  { %v2098_v37 = vsel %vm1980_vm5, %v2096_v36, 0.0  ;;  %2852 = vmatpush3.msra.mxu1 %v2169_v14 }
 0xdc4   :  { %2099 = vadd.xlane.f32.xlu0 %v2098_v37  ;;  %v2168_v37 = vld [vmem:[#allocation9 + $0xe0] sm:$0xff] }
 0xdc5   :  { %2853 = vmatprep.subr.mxu1 %v2168_v37 }
 0xdc6   :  { %2854 = vmatpush3.msra.mxu1 %v2168_v37 }
 0xdc7   :  { %2865 = vmatprep.subr.mxu1 %v2350_v21 }
 0xdc8   :  { %2102 = vadd.xlane.f32.xlu0 %v2101_v41 }
 0xe4d   :  { %v2100_v24 = vpop.xlane.xlu0 %2099 }
 0xe4e   :  { %v2108_v27 = vadd.f32 %v2107_v63, %v2100_v24 }
 0xe50   :  { %v2110_v48 = vsub.f32 0.0, %v2108_v27 }
 0xe51   :  { %v2103_v49 = vpop.xlane.xlu0 %2102 }
 0xe52   :  { %v2112_v50 = vmul.f32 1.442695, %v2110_v48  ;;  %v2109_v51 = vadd.f32 %v2107_v63, %v2103_v49  ;;  %v2349_v63 = vld [vmem:[#allocation9 + $0xf8] sm:$0xff] }
 0xe54   :  { %2986 = vpow2.f32 %v2112_v50  ;;  %v2111_v19 = vsub.f32 0.0, %v2109_v51 }
 0xe56   :  { %v2114_v52 = vmul.f32 1.442695, %v2111_v19 }
 0xe58   :  { %2988 = vpow2.f32 %v2114_v52 }
 0xe59   :  { %2990 = vrcp.f32 %v1999_v55 }
 0xe61   :  { %v2987_v57 = vpop.eup %2986 }
 0xe62   :  { %v2116_v58 = vadd.f32 1.0, %v2987_v57  ;;  %v2628_v57 = vld [vmem:[#allocation9 + $0x108] ss:$0 sm:$0xff] }
 0xe64   :  { %2992 = vrcp.f32 %v2116_v58 }
 0xe65   :  { %v2989_v13 = vpop.eup %2988  ;;  %2994 = vrcp.f32 %v2000_v54 }
 0xe66   :  { %v2117_v59 = vadd.f32 1.0, %v2989_v13  ;;  %v2991_v35 = vpop.eup %2990 }
 0xe68   :  { %2996 = vrcp.f32 %v2117_v59 }
 0xe71   :  { %v2993_v60 = vpop.eup %2992 }
 0xe72   :  { %v2120_v61 = vmax.f32 %v2991_v35, %v2993_v60  ;;  %v2995_v62 = vpop.eup %2994 }
 0xe74   :  { %v2122_v1 = vsub.f32 %v2991_v35, %v2120_v61  ;;  %v2128_v30 = vsub.f32 %v2993_v60, %v2120_v61 }
 0xe75   :  { %v2997_v2 = vpop.eup %2996 }
 0xe76   :  { %v2124_v28 = vmul.f32 1.442695, %v2122_v1  ;;  %v2121_v42 = vmax.f32 %v2995_v62, %v2997_v2  ;;  %v2130_v3 = vmul.f32 1.442695, %v2128_v30 }
 0xe78   :  { %2998 = vpow2.f32 %v2124_v28  ;;  %v2129_v4 = vsub.f32 %v2997_v2, %v2121_v42  ;;  %v2123_v5 = vsub.f32 %v2995_v62, %v2121_v42  ;;  %v2633_v42 = vld [vmem:[#allocation9 + $0x118] ss:$0 sm:$0xff] }
 0xe79   :  { %3000 = vpow2.f32 %v2130_v3 }
 0xe7a   :  { %v2132_v6 = vmul.f32 1.442695, %v2129_v4  ;;  %v2126_v7 = vmul.f32 1.442695, %v2123_v5 }
 0xe7c   :  { %3002 = vpow2.f32 %v2132_v6 }
 0xe7d   :  { %3004 = vpow2.f32 %v2126_v7 }
 0xe85   :  { %v2999_v38 = vpop.eup %2998 }
 0xe86   :  { %v3001_v10 = vpop.eup %3000 }
 0xe87   :  { %v2134_v11 = vadd.f32 %v3001_v10, %v2999_v38 }
 0xe89   :  { %v3003_v12 = vpop.eup %3002  ;;  %3006 = vrcp.f32 %v2134_v11 }
 0xe8a   :  { %v3005_v18 = vpop.eup %3004 }
 0xe8b   :  { %v2135_v22 = vadd.f32 %v3005_v18, %v3003_v12 }
 0xe8d   :  { %3008 = vrcp.f32 %v2135_v22 }
 0xe96   :  { %v3007_v23 = vpop.eup %3006 }
 0xe97   :  { %v2152_v29 = vmul.f32 %v3007_v23, %v3001_v10  ;;  %v2138_v32 = vmul.f32 %v3007_v23, %v2999_v38 }
 0xe99   :  { %2156 = vperm.xlu0 %2901, %v2152_v29   ;;  %2142 = vperm.xlu1 %2900, %v2138_v32  }
 0xe9a   :  { %v3009_v34 = vpop.eup %3008 }
 0xe9b   :  { %v2139_v36 = vmul.f32 %v3009_v34, %v3005_v18  ;;  %v2153_v39 = vmul.f32 %v3009_v34, %v3003_v12 }
 0xe9d   :  { %2147 = vperm.xlu1 %2900, %v2139_v36  }
 0xea1   :  { %2161 = vperm.xlu1 %2900, %v2153_v39  }
 0xf14   :  { %v2157_v41 = vpop.permute.xlu0 %2156  ;;  %v2143_v53 = vpop.permute.xlu1 %2142 }
 0xf15   :  { %v2164_v20 = vmul.f32 %v2157_v41, %v3425_v15  ;;  %v2150_v31 = vmul.f32 %v2143_v53, %v3373_v26 }
 0xf17   :  { %2855 = vmatprep.mubr.msk.f32.mxu1 %vm102_vm1, %v2164_v20  ;;  %2862 = vmatprep.mubr.msk.f32.mxu0 %vm102_vm1, %v2150_v31 }
 0xf18   :  { %v2148_v43 = vpop.permute.xlu1 %2147 }
 0xf19   :  { %v2151_v17 = vmul.f32 %v2148_v43, %v3378_v0 }
 0xf1b   :  { %2863 = vmatmul.mubr.msk.f32.vlgmr.msra.gmra.mxu0 %vm102_vm1, %v2151_v17 }
 0xf1c   :  { %v2162_v44 = vpop.permute.xlu1 %2161  ;;  %2873 = vmatpush3.msra.mxu0 %v2447_v56 }
 0xf1d   :  { %v2165_v40 = vmul.f32 %v2162_v44, %v3427_v16 }
 0xf1f   :  { %2856 = vmatmul.mubr.msk.f32.vlgmr.msra.gmra.mxu1 %vm102_vm1, %v2165_v40 }
 0xf20   :  { %2866 = vmatpush3.msra.mxu1 %v2350_v21 }
 0xf21   :  { %2867 = vmatprep.subr.mxu1 %v2349_v63 }
 0xf22   :  { %2868 = vmatpush3.msra.mxu1 %v2349_v63 }
 0xfdb   :  { %v2864_v26 = vpop.f32.mrf.mxu0 }
 0xfdd   :  { %v2323_v24 = vpop.f32.mrf.mxu0 }
 0xfdf   :  { %v2857_v15 = vpop.f32.mrf.mxu1 }
 0xfe0   :  { %v2329_v46 = vadd.f32 %v2864_v26, %v2857_v15 }
 0xfe1   :  { %v2242_v27 = vpop.f32.mrf.mxu1 }
 0xfe2   :  { %v2338_v0 = vadd.f32 %v2625_v45, %v2329_v46  ;;  %v2324_v47 = vadd.f32 %v2323_v24, %v2242_v27 }
 0xfe4   :  { %v2343_v48 = vmul.f32 1.442695, %v2338_v0  ;;  %v2337_v49 = vadd.f32 %v2625_v45, %v2324_v47  ;;  %vm2340_vm9 = vcmp.gt.f32.partialorder %v2338_v0, 0.0 }
 0xfe6   :  { %3010 = vpow2.f32 %v2343_v48  ;;  %v2341_v16 = vmul.f32 1.442695, %v2337_v49  ;;  %vm2339_vm8 = vcmp.gt.f32.partialorder %v2337_v49, 0.0 }
 0xfe8   :  { %3012 = vpow2.f32 %v2341_v16 }
 0xff3   :  { %v3011_v50 = vpop.eup %3010 }
 0xff4   :  { %v2627_v19 = vadd.f32 -1.0, %v3011_v50 }
 0xff5   :  { %v3013_v51 = vpop.eup %3012 }
 0xff6   :  { %v2626_v52 = vadd.f32 -1.0, %v3013_v51  ;;  %v2348_v55 = vsel %vm2340_vm9, %v2338_v0, %v2627_v19 }
 0xff8   :  { %v2347_v8 = vsel %vm2339_vm8, %v2337_v49, %v2626_v52 }
 0xff9   :  { %2869 = vmatprep.mubr.msk.f32.mxu1 %vm102_vm1, %v2347_v8 }
 0xffa   :  { %2870 = vmatmul.mubr.msk.f32.vlgmr.msra.gmra.mxu1 %vm102_vm1, %v2348_v55  ;;  %vm2534_vm1 = vcmp.lt.s32.totalorder %v3215_v9, 4 }
0x10ba   :  { %v2871_v58 = vpop.f32.mrf.mxu1 }
0x10bb   :  { %v2434_v54 = vadd.f32 %v2871_v58, %v2628_v57 }
0x10bc   :  { %v2428_v13 = vpop.f32.mrf.mxu1 }
0x10bd   :  { %v2441_v59 = vmul.f32 1.442695, %v2434_v54  ;;  %v2429_v35 = vadd.f32 %v2628_v57, %v2428_v13  ;;  %vm2438_vm11 = vcmp.gt.f32.partialorder %v2434_v54, 0.0 }
0x10bf   :  { %3014 = vpow2.f32 %v2441_v59  ;;  %v2439_v60 = vmul.f32 1.442695, %v2429_v35  ;;  %vm2437_vm10 = vcmp.gt.f32.partialorder %v2429_v35, 0.0 }
0x10c1   :  { %3016 = vpow2.f32 %v2439_v60 }
0x10cc   :  { %v3015_v61 = vpop.eup %3014 }
0x10cd   :  { %v2632_v1 = vadd.f32 -1.0, %v3015_v61 }
0x10ce   :  { %v3017_v62 = vpop.eup %3016 }
0x10cf   :  { %v2631_v30 = vadd.f32 -1.0, %v3017_v62  ;;  %v2446_v28 = vsel %vm2438_vm11, %v2434_v54, %v2632_v1 }
0x10d1   :  { %v2445_v2 = vsel %vm2437_vm10, %v2429_v35, %v2631_v30 }
0x10d2   :  { %2874 = vmatprep.mubr.msk.f32.mxu0 %vm1980_vm5, %v2445_v2 }
0x10d3   :  { %2875 = vmatmul.mubr.msk.f32.vlgmr.msra.gmra.mxu0 %vm1980_vm5, %v2446_v28 }
0x1193   :  { %v2876_v3 = vpop.f32.mrf.mxu0 }
0x1194   :  { %v2531_v4 = vadd.f32 %v2876_v3, %v2633_v42 }
0x1195   :  { %v2525_v5 = vpop.f32.mrf.mxu0 }
0x1196   :  { %v2526_v6 = vadd.f32 %v2633_v42, %v2525_v5  ;;  %v2538_v7 = vsel %vm2534_vm1, %v2531_v4, -1e+30 }
0x1197   :  { %2541 = vmax.xlane.f32.xlu0 %v2538_v7 }
0x1198   :  { %v2537_v38 = vsel %vm2534_vm1, %v2526_v6, -1e+30 }
0x1199   :  { %2539 = vmax.xlane.f32.xlu1 %v2537_v38 }
0x1220   :  { %v2542_v10 = vpop.xlane.xlu0 %2541 }
0x1221   :  { %v2544_v12 = vsub.f32 %v2538_v7, %v2542_v10 }
0x1222   :  { %v2540_v11 = vpop.xlane.xlu1 %2539 }
0x1223   :  { %v2543_v18 = vsub.f32 %v2537_v38, %v2540_v11  ;;  %v2547_v23 = vmul.f32 1.442695, %v2544_v12 }
0x1225   :  { %v2545_v22 = vmul.f32 1.442695, %v2543_v18 }
0x1227   :  { %3018 = vpow2.f32 %v2545_v22 }
0x1228   :  { %3020 = vpow2.f32 %v2547_v23 }
0x1234   :  { %v3019_v25 = vpop.eup %3018 }
0x1235   :  { %2549 = vadd.xlane.f32.xlu1 %v3019_v25  ;;  %v3021_v29 = vpop.eup %3020 }
0x1239   :  { %2551 = vadd.xlane.f32.xlu1 %v3021_v29 }
0x12be   :  { %v2550_v9 = vpop.xlane.xlu1 %2549 }
0x12bf   :  { %3022 = vlog2.f32 %v2550_v9 }
0x12c2   :  { %v2552_v32 = vpop.xlane.xlu1 %2551 }
0x12c3   :  { %3024 = vlog2.f32 %v2552_v32 }
0x12cc   :  { %v3023_v33 = vpop.eup %3022 }
0x12cd   :  { %v2554_v14 = vmul.f32 0.6931472, %v3023_v33 }
0x12cf   :  { %v2557_v34 = vsub.f32 %v2543_v18, %v2554_v14 }
0x12d0   :  { %v3025_v36 = vpop.eup %3024 }
0x12d1   :  { %2559 = vst [vmem:[%s3463_s5] sm:$0xff] %v2557_v34  ;;  %v2556_v37 = vmul.f32 0.6931472, %v3025_v36 }
0x12d3   :  { %v2558_v39 = vsub.f32 %v2544_v12, %v2556_v37 }
0x12d5   :  { %2560 = vst [vmem:[%s3463_s5 + $0x8] sm:$0xff] %v2558_v39 }
0x12d6   :  { %2565 = vsyncpa [#allocation3], 1 }
0x12d7   :  { %2566 = vsyncpa [#allocation5], 1 }
0x12d8   :  { %2567 = vsyncpa [#allocation8], 1 }

</bundles_post_ra>
